<compile_context>
chip_gen: v7x
topology: tpu7x:2x2x1
jax: 0.10.0
libtpu: 0.0.40
codegen_flags: <defaults>
</compile_context>

<pallas_src>
import jax
import jax.numpy as jnp
from jax.experimental import pallas as pl
from jax.experimental.pallas import tpu as pltpu

LANE = 128
SUBLANE = 8


def _round_up(n, m):
    return (n + m - 1) // m * m


def mlp_kernel(x_ref, w1_ref, b1_ref, w2_ref, b2_ref,
               w3_ref, b3_ref, w4_ref, b4_ref, o_ref):
    """One batch tile through the whole net. Weights are VMEM-resident bf16,
    accumulation is f32 on the MXU, biases added in the f32 epilogue."""
    x = x_ref[...].astype(jnp.bfloat16)                      # (TM, s_size) cast in-kernel

    h = jnp.dot(x, w1_ref[...], preferred_element_type=jnp.float32) + b1_ref[...]
    h = jnp.maximum(h, 0.0).astype(jnp.bfloat16)

    h = jnp.dot(h, w2_ref[...], preferred_element_type=jnp.float32) + b2_ref[...]
    h = jnp.maximum(h, 0.0).astype(jnp.bfloat16)

    h = jnp.dot(h, w3_ref[...], preferred_element_type=jnp.float32) + b3_ref[...]
    h = jnp.maximum(h, 0.0).astype(jnp.bfloat16)

    o_ref[...] = (
        jnp.dot(h, w4_ref[...], preferred_element_type=jnp.float32) + b4_ref[...]
    )


def init_params(key, s_size, a_size):
    """PyTorch-equivalent init: weights ~ N(0, 0.1) stored as (in, out);
    biases default U(-1/sqrt(fan_in), +1/sqrt(fan_in)), stored as (1, out)."""
    dims = [(s_size, 100), (100, 1024), (1024, 512), (512, a_size)]
    params = {}
    for i, (fan_in, fan_out) in enumerate(dims, start=1):
        key, kw, kb = jax.random.split(key, 3)
        params[f"w{i}"] = 0.1 * jax.random.normal(kw, (fan_in, fan_out), jnp.float32)
        bound = 1.0 / jnp.sqrt(jnp.float32(fan_in))
        params[f"b{i}"] = jax.random.uniform(
            kb, (1, fan_out), jnp.float32, minval=-bound, maxval=bound)
    return params


def prepare_params(params):
    """Zero-pad output feature dims (and inner dims of layers 2..4) up to a
    multiple of 128 and cast weights to bf16.  Layer-1's input dim is kept at
    s_size so x needs no lane padding and layer-1 does no wasted K work.
    Padded rows/cols are zero so they contribute nothing.  Biases stay f32."""
    pp = {}
    for i in range(1, 5):
        w, b = params[f"w{i}"], params[f"b{i}"]
        kin, kout = w.shape
        kin_p = kin if i == 1 else _round_up(kin, LANE)
        kout_p = _round_up(kout, LANE)
        w_p = jnp.zeros((kin_p, kout_p), jnp.float32).at[:kin, :kout].set(w)
        b_p = jnp.zeros((1, kout_p), jnp.float32).at[:, :kout].set(b)
        pp[f"w{i}"] = w_p.astype(jnp.bfloat16)
        pp[f"b{i}"] = b_p
    return pp


def net_forward(x, padded_params, a_size, *, tm_max=256):
    """x: (B, s_size) f32. Returns (B, a_size) f32."""
    b, s = x.shape
    assert padded_params["w1"].shape[0] == s
    a_pad = padded_params["w4"].shape[1]

    # ---- batch tiling -------------------------------------------------------
    b_pad = _round_up(max(b, 1), SUBLANE)
    tm = b_pad if b_pad <= tm_max else tm_max
    # v7x has 2 TensorCores: give big batches >= 2 grid steps so the
    # "parallel" grid axis actually shards work across both cores.
    if b_pad // tm < 2 and b_pad >= 2 * 128:
        tm = _round_up(-(-b_pad // 2), SUBLANE)
    b_pad = _round_up(b_pad, tm)

    # Only a cheap batch-row pad when needed; no lane padding / cast of x here.
    if b_pad != b:
        x = jnp.zeros((b_pad, s), x.dtype).at[:b].set(x)

    args = (x,
            padded_params["w1"], padded_params["b1"],
            padded_params["w2"], padded_params["b2"],
            padded_params["w3"], padded_params["b3"],
            padded_params["w4"], padded_params["b4"])

    def resident(arr):
        # Constant block index -> VMEM-resident across all batch tiles.
        # Single-buffered: it is fetched once and never refetched.
        return pl.BlockSpec(arr.shape, lambda i: (0,) * arr.ndim,
                            pipeline_mode=pl.Buffered(1))

    in_specs = [pl.BlockSpec((tm, s), lambda i: (i, 0))]
    in_specs += [resident(a) for a in args[1:]]

    flops_per_row = 2 * sum(
        padded_params[f"w{i}"].shape[0] * padded_params[f"w{i}"].shape[1]
        for i in range(1, 5))
    bytes_accessed = (
        x.size * x.dtype.itemsize
        + sum(int(p.size) * p.dtype.itemsize for p in padded_params.values())
        + b_pad * a_pad * 4)

    out = pl.pallas_call(
        mlp_kernel,
        out_shape=jax.ShapeDtypeStruct((b_pad, a_pad), jnp.float32),
        grid=(b_pad // tm,),
        in_specs=in_specs,
        out_specs=pl.BlockSpec((tm, a_pad), lambda i: (i, 0)),
        compiler_params=pltpu.CompilerParams(
            dimension_semantics=("parallel",),       # shard batch over TCs (v7x)
            vmem_limit_bytes=32 * 1024 * 1024),      # ample headroom, fits v7x
        cost_estimate=pl.CostEstimate(
            flops=flops_per_row * b_pad,
            transcendentals=0,
            bytes_accessed=bytes_accessed),
    )(*args)

    return out[:b, :a_size]


def net_forward_ref_f32(x, params):
    """Pure f32 JAX reference matching the original PyTorch module."""
    h = jnp.maximum(x @ params["w1"] + params["b1"], 0.0)
    h = jnp.maximum(h @ params["w2"] + params["b2"], 0.0)
    h = jnp.maximum(h @ params["w3"] + params["b3"], 0.0)
    return h @ params["w4"] + params["b4"]


def net_forward_ref_bf16(x, padded_params, a_size):
    """Pure-JAX reference mimicking the kernel's bf16-weight / f32-accumulate
    arithmetic (for a tight numeric check)."""
    h = x.astype(jnp.bfloat16)
    y = None
    for i in range(1, 5):
        y = jnp.dot(h, padded_params[f"w{i}"],
                    preferred_element_type=jnp.float32) + padded_params[f"b{i}"]
        if i < 4:
            h = jnp.maximum(y, 0.0).astype(jnp.bfloat16)
    return y[:, :a_size]


if __name__ == "__main__":
    key = jax.random.PRNGKey(0)
    s_size, a_size, batch = 16, 4, 8

    key, kx = jax.random.split(key)
    params = init_params(key, s_size, a_size)
    padded_params = prepare_params(params)
    x = jax.random.normal(kx, (batch, s_size), jnp.float32)

    out = net_forward(x, padded_params, a_size)
    out = jax.block_until_ready(out)
    assert out.shape == (batch, a_size)

    # Tight check vs. a reference doing identical bf16-weight arithmetic.
    ref_bf16 = net_forward_ref_bf16(x, padded_params, a_size)
    assert jnp.allclose(out, ref_bf16, atol=2e-3, rtol=2e-3)

    # Loose check vs. the exact f32 semantics of the original PyTorch module
    # (difference is only the intentional bf16 weight/activation quantization).
    ref_f32 = net_forward_ref_f32(x, params)
    assert jnp.allclose(out, ref_f32, atol=5e-2, rtol=5e-2)

    print("KERNEL_OK")
</pallas_src>

<mosaic_0001>
module attributes {stable_mosaic.version = 11 : i64} {
  func.func @mlp_kernel(%arg0: i32, %arg1: memref<8x16xf32, #tpu.memory_space<vmem>>, %arg2: memref<16x128xbf16, #tpu.memory_space<vmem>>, %arg3: memref<1x128xf32, #tpu.memory_space<vmem>>, %arg4: memref<128x1024xbf16, #tpu.memory_space<vmem>>, %arg5: memref<1x1024xf32, #tpu.memory_space<vmem>>, %arg6: memref<1024x512xbf16, #tpu.memory_space<vmem>>, %arg7: memref<1x512xf32, #tpu.memory_space<vmem>>, %arg8: memref<512x128xbf16, #tpu.memory_space<vmem>>, %arg9: memref<1x128xf32, #tpu.memory_space<vmem>>, %arg10: memref<8x128xf32, #tpu.memory_space<vmem>>) attributes {dimension_semantics = [#tpu.dimension_semantics<parallel>], iteration_bounds = array<i64: 1>, scalar_prefetch = 0 : i64, scratch_operands = 0 : i64, tpu.core_type = #tpu.core_type<tc>, window_params = [{transform_indices = @transform_0, window_bounds = array<i64: 8, 16>}, {pipeline_mode = #tpu.pipeline_mode<synchronous>, transform_indices = @transform_1, window_bounds = array<i64: 16, 128>}, {pipeline_mode = #tpu.pipeline_mode<synchronous>, transform_indices = @transform_2, window_bounds = array<i64: 1, 128>}, {pipeline_mode = #tpu.pipeline_mode<synchronous>, transform_indices = @transform_3, window_bounds = array<i64: 128, 1024>}, {pipeline_mode = #tpu.pipeline_mode<synchronous>, transform_indices = @transform_4, window_bounds = array<i64: 1, 1024>}, {pipeline_mode = #tpu.pipeline_mode<synchronous>, transform_indices = @transform_5, window_bounds = array<i64: 1024, 512>}, {pipeline_mode = #tpu.pipeline_mode<synchronous>, transform_indices = @transform_6, window_bounds = array<i64: 1, 512>}, {pipeline_mode = #tpu.pipeline_mode<synchronous>, transform_indices = @transform_7, window_bounds = array<i64: 512, 128>}, {pipeline_mode = #tpu.pipeline_mode<synchronous>, transform_indices = @transform_8, window_bounds = array<i64: 1, 128>}, {transform_indices = @transform_9, window_bounds = array<i64: 8, 128>}]} {
    %c0 = arith.constant 0 : index
    %c0_0 = arith.constant 0 : index
    %0 = vector.load %arg1[%c0, %c0_0] : memref<8x16xf32, #tpu.memory_space<vmem>>, vector<8x16xf32>
    %1 = arith.truncf %0 : vector<8x16xf32> to vector<8x16xbf16>
    %c0_1 = arith.constant 0 : index
    %c0_2 = arith.constant 0 : index
    %2 = vector.load %arg2[%c0_1, %c0_2] : memref<16x128xbf16, #tpu.memory_space<vmem>>, vector<16x128xbf16>
    %cst = arith.constant dense<0.000000e+00> : vector<8x128xf32>
    %3 = tpu.matmul %1, %2, %cst {dimension_numbers = #tpu.dot_dimension_numbers<[1], [0], [0], [1], [0, 0, 1, 1], [], []>} : vector<8x16xbf16>, vector<16x128xbf16>, vector<8x128xf32> -> vector<8x128xf32>
    %c0_3 = arith.constant 0 : index
    %c0_4 = arith.constant 0 : index
    %4 = vector.load %arg3[%c0_3, %c0_4] : memref<1x128xf32, #tpu.memory_space<vmem>>, vector<1x128xf32>
    %5 = vector.broadcast %4 : vector<1x128xf32> to vector<8x128xf32>
    %6 = arith.addf %3, %5 : vector<8x128xf32>
    %cst_5 = arith.constant 0.000000e+00 : f32
    %7 = vector.broadcast %cst_5 : f32 to vector<8x128xf32>
    %8 = arith.maximumf %6, %7 : vector<8x128xf32>
    %9 = arith.truncf %8 : vector<8x128xf32> to vector<8x128xbf16>
    %c0_6 = arith.constant 0 : index
    %c0_7 = arith.constant 0 : index
    %10 = vector.load %arg4[%c0_6, %c0_7] : memref<128x1024xbf16, #tpu.memory_space<vmem>>, vector<128x1024xbf16>
    %cst_8 = arith.constant dense<0.000000e+00> : vector<8x1024xf32>
    %11 = tpu.matmul %9, %10, %cst_8 {dimension_numbers = #tpu.dot_dimension_numbers<[1], [0], [0], [1], [0, 0, 1, 1], [], []>} : vector<8x128xbf16>, vector<128x1024xbf16>, vector<8x1024xf32> -> vector<8x1024xf32>
    %c0_9 = arith.constant 0 : index
    %c0_10 = arith.constant 0 : index
    %12 = vector.load %arg5[%c0_9, %c0_10] : memref<1x1024xf32, #tpu.memory_space<vmem>>, vector<1x1024xf32>
    %13 = vector.broadcast %12 : vector<1x1024xf32> to vector<8x1024xf32>
    %14 = arith.addf %11, %13 : vector<8x1024xf32>
    %cst_11 = arith.constant 0.000000e+00 : f32
    %15 = vector.broadcast %cst_11 : f32 to vector<8x1024xf32>
    %16 = arith.maximumf %14, %15 : vector<8x1024xf32>
    %17 = arith.truncf %16 : vector<8x1024xf32> to vector<8x1024xbf16>
    %c0_12 = arith.constant 0 : index
    %c0_13 = arith.constant 0 : index
    %18 = vector.load %arg6[%c0_12, %c0_13] : memref<1024x512xbf16, #tpu.memory_space<vmem>>, vector<1024x512xbf16>
    %cst_14 = arith.constant dense<0.000000e+00> : vector<8x512xf32>
    %19 = tpu.matmul %17, %18, %cst_14 {dimension_numbers = #tpu.dot_dimension_numbers<[1], [0], [0], [1], [0, 0, 1, 1], [], []>} : vector<8x1024xbf16>, vector<1024x512xbf16>, vector<8x512xf32> -> vector<8x512xf32>
    %c0_15 = arith.constant 0 : index
    %c0_16 = arith.constant 0 : index
    %20 = vector.load %arg7[%c0_15, %c0_16] : memref<1x512xf32, #tpu.memory_space<vmem>>, vector<1x512xf32>
    %21 = vector.broadcast %20 : vector<1x512xf32> to vector<8x512xf32>
    %22 = arith.addf %19, %21 : vector<8x512xf32>
    %cst_17 = arith.constant 0.000000e+00 : f32
    %23 = vector.broadcast %cst_17 : f32 to vector<8x512xf32>
    %24 = arith.maximumf %22, %23 : vector<8x512xf32>
    %25 = arith.truncf %24 : vector<8x512xf32> to vector<8x512xbf16>
    %c0_18 = arith.constant 0 : index
    %c0_19 = arith.constant 0 : index
    %26 = vector.load %arg8[%c0_18, %c0_19] : memref<512x128xbf16, #tpu.memory_space<vmem>>, vector<512x128xbf16>
    %cst_20 = arith.constant dense<0.000000e+00> : vector<8x128xf32>
    %27 = tpu.matmul %25, %26, %cst_20 {dimension_numbers = #tpu.dot_dimension_numbers<[1], [0], [0], [1], [0, 0, 1, 1], [], []>} : vector<8x512xbf16>, vector<512x128xbf16>, vector<8x128xf32> -> vector<8x128xf32>
    %c0_21 = arith.constant 0 : index
    %c0_22 = arith.constant 0 : index
    %28 = vector.load %arg9[%c0_21, %c0_22] : memref<1x128xf32, #tpu.memory_space<vmem>>, vector<1x128xf32>
    %29 = vector.broadcast %28 : vector<1x128xf32> to vector<8x128xf32>
    %30 = arith.addf %27, %29 : vector<8x128xf32>
    %c0_23 = arith.constant 0 : index
    %c0_24 = arith.constant 0 : index
    %31 = vector.load %arg10[%c0_23, %c0_24] : memref<8x128xf32, #tpu.memory_space<vmem>>, vector<8x128xf32>
    tpu.vector_store %arg10[%c0_23, %c0_24], %30 {strides = array<i32>} : memref<8x128xf32, #tpu.memory_space<vmem>>, vector<8x128xf32>,
    return
  }
  func.func @transform_0(%arg0: i32) -> (i32, i32) {
    %c0_i32 = arith.constant 0 : i32
    %c0_i32_0 = arith.constant 0 : i32
    return %arg0, %c0_i32 : i32, i32
  }
  func.func @transform_1(%arg0: i32) -> (i32, i32) {
    %c0_i32 = arith.constant 0 : i32
    %c0_i32_0 = arith.constant 0 : i32
    %c0_i32_1 = arith.constant 0 : i32
    return %c0_i32, %c0_i32_0 : i32, i32
  }
  func.func @transform_2(%arg0: i32) -> (i32, i32) {
    %c0_i32 = arith.constant 0 : i32
    %c0_i32_0 = arith.constant 0 : i32
    %c0_i32_1 = arith.constant 0 : i32
    return %c0_i32, %c0_i32_0 : i32, i32
  }
  func.func @transform_3(%arg0: i32) -> (i32, i32) {
    %c0_i32 = arith.constant 0 : i32
    %c0_i32_0 = arith.constant 0 : i32
    %c0_i32_1 = arith.constant 0 : i32
    return %c0_i32, %c0_i32_0 : i32, i32
  }
  func.func @transform_4(%arg0: i32) -> (i32, i32) {
    %c0_i32 = arith.constant 0 : i32
    %c0_i32_0 = arith.constant 0 : i32
    %c0_i32_1 = arith.constant 0 : i32
    return %c0_i32, %c0_i32_0 : i32, i32
  }
  func.func @transform_5(%arg0: i32) -> (i32, i32) {
    %c0_i32 = arith.constant 0 : i32
    %c0_i32_0 = arith.constant 0 : i32
    %c0_i32_1 = arith.constant 0 : i32
    return %c0_i32, %c0_i32_0 : i32, i32
  }
  func.func @transform_6(%arg0: i32) -> (i32, i32) {
    %c0_i32 = arith.constant 0 : i32
    %c0_i32_0 = arith.constant 0 : i32
    %c0_i32_1 = arith.constant 0 : i32
    return %c0_i32, %c0_i32_0 : i32, i32
  }
  func.func @transform_7(%arg0: i32) -> (i32, i32) {
    %c0_i32 = arith.constant 0 : i32
    %c0_i32_0 = arith.constant 0 : i32
    %c0_i32_1 = arith.constant 0 : i32
    return %c0_i32, %c0_i32_0 : i32, i32
  }
  func.func @transform_8(%arg0: i32) -> (i32, i32) {
    %c0_i32 = arith.constant 0 : i32
    %c0_i32_0 = arith.constant 0 : i32
    %c0_i32_1 = arith.constant 0 : i32
    return %c0_i32, %c0_i32_0 : i32, i32
  }
  func.func @transform_9(%arg0: i32) -> (i32, i32) {
    %c0_i32 = arith.constant 0 : i32
    %c0_i32_0 = arith.constant 0 : i32
    return %arg0, %c0_i32 : i32, i32
  }
}

</mosaic_0001>

<bundles_post_ra>
// kernel: tpu_custom_call.1
= control target key start
LH: loop header
LB: loop body
LE: loop exit
PB: predicated region body
PF: predicated region fallthrough
CT: control target
= control target key end

     0   :  { %14 = vsyncpa [#allocation3], 0  ;;  %s4252_s0 = inlined_call_operand.hbm [shape: f32[8,16], index: 0, kind: input, shape index: {}]   ;;  %s4253_s1 = inlined_call_operand.hbm [shape: bf16[16,128], index: 1, kind: input, shape index: {}]   ;;  %s4254_s2 = inlined_call_operand.vmem [shape: f32[1,128], index: 2, kind: input, shape index: {}]   ;;  %s4255_s3 = inlined_call_operand.hbm [shape: bf16[128,1024], index: 3, kind: input, shape index: {}]   ;;  %s4256_s4 = inlined_call_operand.vmem [shape: f32[1,1024], index: 4, kind: input, shape index: {}]   ;;  %s4257_s5 = inlined_call_operand.hbm [shape: bf16[1024,512], index: 5, kind: input, shape index: {}]   ;;  %s4258_s6 = inlined_call_operand.vmem [shape: f32[1,512], index: 6, kind: input, shape index: {}]   ;;  %s4259_s7 = inlined_call_operand.hbm [shape: bf16[512,128], index: 7, kind: input, shape index: {}]   ;;  %s4260_s8 = inlined_call_operand.vmem [shape: f32[1,128], index: 8, kind: input, shape index: {}]   ;;  %s4261_s9 = inlined_call_operand.hbm [shape: f32[8,128], index: 9, kind: output, shape index: {}]  }
   0x1   :  { %15 = vsyncpa [#allocation6], 0 }
   0x2   :  { %16 = vsyncpa [#allocation9], 0 }
   0x3   :  { %17 = vsyncpa [#allocation4], 0  ;;  %s4032_s30 = smov [#allocation5]   ;;  %s3892_s13 = scalar_lea.hbm %s4253_s1, 128 }
   0x4   :  { %s33_s10 = sshll.u32 %s4032_s30, 4  ;;  %p3893_p0 = scmp.ne.s32.totalorder %s4253_s1, %s3892_s13  ;;  %s34_s10 = int_to_ptr.vmem [resolvable:$true] %s33_s10 }
   0x5   :  { %p3896_p1 = scmp.lt.u32.totalorder %s3892_s13, %s4253_s1 }
   0x7   :  { %p3898_p2 = pnand %p3896_p1, %p3893_p0 }
   0x9   :  { %3901 = shalt.err (!%p3898_p2)
}
   0xa   :  { %s3902_s18 = scalar_lea.vmem %s34_s10, 128  ;;  %p3907_p4 = scmp.lt.s32.totalorder %s34_s10, %s34_s10 }
   0xb   :  { %p3903_p3 = scmp.ne.s32.totalorder %s34_s10, %s3902_s18  ;;  %p3908_p5 = scmp.lt.s32.totalorder %s3902_s18, %s3902_s18 }
   0xd   :  { %p3909_p6 = por %p3908_p5, %p3907_p4 }
   0xf   :  { %p3910_p7 = pnand %p3909_p6, %p3903_p3 }
  0x11   :  { %3913 = shalt.err (!%p3910_p7)
}
  0x12   :  { %s4033_s19 = smov 64   ;;  %s4034_s20 = smov 4  }
  0x13   :  { %39 = dma.hbm_to_vmem [thread:$0]  %s4253_s1, 128, %s34_s10, [#allocation6], %s4033_s19, %s4033_s19, %s4034_s20  }
  0x14   :  { %s4035_s23 = smov [#allocation8]   ;;  %s3914_s27 = scalar_lea.hbm %s4257_s5, 32768 }
  0x15   :  { %s61_s24 = sshll.u32 %s4035_s23, 4  ;;  %p3915_p8 = scmp.ne.s32.totalorder %s4257_s5, %s3914_s27  ;;  %s62_s24 = int_to_ptr.vmem [resolvable:$true] %s61_s24 }
  0x16   :  { %p3918_p9 = scmp.lt.u32.totalorder %s3914_s27, %s4257_s5 }
  0x18   :  { %p3920_p10 = pnand %p3918_p9, %p3915_p8 }
  0x1a   :  { %3923 = shalt.err (!%p3920_p10)
}
  0x1b   :  { %s3924_s12 = scalar_lea.vmem %s62_s24, 32768  ;;  %p3929_p12 = scmp.lt.s32.totalorder %s62_s24, %s62_s24 }
  0x1c   :  { %p3925_p11 = scmp.ne.s32.totalorder %s62_s24, %s3924_s12  ;;  %p3930_p13 = scmp.lt.s32.totalorder %s3924_s12, %s3924_s12 }
  0x1e   :  { %p3931_p0 = por %p3930_p13, %p3929_p12 }
  0x20   :  { %p3932_p1 = pnand %p3931_p0, %p3925_p11 }
  0x22   :  { %3935 = shalt.err (!%p3932_p1)
}
  0x23   :  { %s4036_s1 = smov 256   ;;  %s4037_s10 = smov 16  }
  0x24   :  { %67 = dma.hbm_to_vmem [thread:$0]  %s4257_s5, 32768, %s62_s24, [#allocation9], %s4036_s1, %s4036_s1, %s4037_s10  }
  0x25   :  { %s4038_s15 = smov [#allocation2]   ;;  %s4039_s17 = smov [#allocation7]  }
  0x26   :  { %s24_s16 = sshll.u32 %s4038_s15, 4  ;;  %s47_s18 = sshll.u32 %s4039_s17, 4  ;;  %s25_s16 = int_to_ptr.vmem [resolvable:$true] %s24_s16  ;;  %s4124_s18 = int_to_ptr.vmem [resolvable:$true] %s47_s18 }
  0x27   :  { %s3936_s23 = scalar_lea.hbm %s4252_s0, 128 }
  0x28   :  { %p3937_p2 = scmp.ne.s32.totalorder %s4252_s0, %s3936_s23  ;;  %p3940_p3 = scmp.lt.u32.totalorder %s3936_s23, %s4252_s0 }
  0x2a   :  { %p3942_p4 = pnand %p3940_p3, %p3937_p2 }
  0x2c   :  { %3945 = shalt.err (!%p3942_p4)
}
  0x2d   :  { %s3946_s5 = scalar_lea.vmem %s25_s16, 128  ;;  %p3951_p6 = scmp.lt.s32.totalorder %s25_s16, %s25_s16 }
  0x2e   :  { %p3947_p5 = scmp.ne.s32.totalorder %s25_s16, %s3946_s5  ;;  %p3952_p7 = scmp.lt.s32.totalorder %s3946_s5, %s3946_s5 }
  0x30   :  { %p3953_p8 = por %p3952_p7, %p3951_p6 }
  0x32   :  { %p3954_p9 = pnand %p3953_p8, %p3947_p5 }
  0x34   :  { %3957 = shalt.err (!%p3954_p9)
}
  0x35   :  { %27 = dma.hbm_to_vmem [thread:$0]  %s4252_s0, 128, %s25_s16, [#allocation3]  }
  0x36   :  { %s3958_s12 = scalar_lea.hbm %s4255_s3, 8192 }
  0x37   :  { %p3959_p10 = scmp.ne.s32.totalorder %s4255_s3, %s3958_s12  ;;  %p3962_p11 = scmp.lt.u32.totalorder %s3958_s12, %s4255_s3 }
  0x39   :  { %p3964_p12 = pnand %p3962_p11, %p3959_p10 }
  0x3b   :  { %3967 = shalt.err (!%p3964_p12)
}
  0x3c   :  { %s3968_s15 = scalar_lea.vmem %s4124_s18, 8192  ;;  %p3973_p0 = scmp.lt.s32.totalorder %s4124_s18, %s4124_s18 }
  0x3d   :  { %p3969_p13 = scmp.ne.s32.totalorder %s4124_s18, %s3968_s15  ;;  %p3974_p1 = scmp.lt.s32.totalorder %s3968_s15, %s3968_s15 }
  0x3f   :  { %p3975_p2 = por %p3974_p1, %p3973_p0 }
  0x41   :  { %p3976_p3 = pnand %p3975_p2, %p3969_p13 }
  0x43   :  { %3979 = shalt.err (!%p3976_p3)
}
  0x44   :  { %s4040_s0 = smov 512   ;;  %s4041_s16 = smov 32  }
  0x45   :  { %53 = dma.hbm_to_vmem [thread:$0]  %s4255_s3, 8192, %s4124_s18, [#allocation6], %s4040_s0, %s4040_s0, %s4041_s16  }
  0x46   :  { %s4042_s22 = smov [#allocation10]   ;;  %s3980_s27 = scalar_lea.hbm %s4259_s7, 4096 }
  0x47   :  { %s75_s23 = sshll.u32 %s4042_s22, 4  ;;  %p3981_p4 = scmp.ne.s32.totalorder %s4259_s7, %s3980_s27  ;;  %s76_s23 = int_to_ptr.vmem [resolvable:$true] %s75_s23 }
  0x48   :  { %p3984_p5 = scmp.lt.u32.totalorder %s3980_s27, %s4259_s7 }
  0x4a   :  { %p3986_p6 = pnand %p3984_p5, %p3981_p4 }
  0x4c   :  { %3989 = shalt.err (!%p3986_p6)
}
  0x4d   :  { %s3990_s30 = scalar_lea.vmem %s76_s23, 4096  ;;  %p3995_p8 = scmp.lt.s32.totalorder %s76_s23, %s76_s23 }
  0x4e   :  { %p3991_p7 = scmp.ne.s32.totalorder %s76_s23, %s3990_s30  ;;  %p3996_p9 = scmp.lt.s32.totalorder %s3990_s30, %s3990_s30 }
  0x50   :  { %p3997_p10 = por %p3996_p9, %p3995_p8 }
  0x52   :  { %p3998_p11 = pnand %p3997_p10, %p3991_p7 }
  0x54   :  { %4001 = shalt.err (!%p3998_p11)
}
  0x55   :  { %81 = dma.hbm_to_vmem [thread:$0]  %s4259_s7, 4096, %s76_s23, [#allocation9], %s4033_s19, %s4033_s19, %s4034_s20  }
  0x56   :  { %4024 = dma.done.wait [#allocation3], 128  }
  0x57   :  { %4025 = vsyncadd [#allocation3], 4294967168 }
  0x58   :  { %4026 = dma.done.wait [#allocation6], 8320  }
  0x59   :  { %4027 = vsyncadd [#allocation6], 4294958976 }
  0x5a   :  { %4028 = dma.done.wait [#allocation9], 36864  }
  0x5b   :  { %4029 = vsyncadd [#allocation9], 4294930432  ;;  %v4043_v0 = vmov 0.0   ;;  %vm4044_vm0 = vmmov 0   ;;  %v3475_v1 = vld [vmem:[#allocation5] sm:$0xff]   ;;  %v100_v2 = vld [vmem:[#allocation2] sm:$0xff] }
  0x5c   :  { %3426 = vmatprep.subr.bf16.mxu0 %v4043_v0  ;;  %3428 = vmatprep.mubr.msk.bf16.mxu0 %vm4044_vm0, %v4043_v0  ;;  %v163_v3 = vld [vmem:[#allocation7] sm:$0xff]  ;;  %v101_v5 = vpack.c.bf16 %v100_v2, %v100_v2  ;;  %vm117_vm1 = vcmask 130048   ;;  %v164_v7 = vld [vmem:[#allocation7 + $0x8] sm:$0xff]  ;;  %s4046_s1 = smov [#allocation11]  }
  0x5d   :  { %v167_v4 = vld [vmem:[#allocation7 + $0x20] sm:$0xff]  ;;  %3427 = vmatpush3.bf16.msra.mxu0 %v3475_v1  ;;  %v168_v8 = vld [vmem:[#allocation7 + $0x28] sm:$0xff]  ;;  %s3013_s10 = sshll.u32 %s4046_s1, 4  ;;  %s3014_s10 = int_to_ptr.vmem [resolvable:$true] %s3013_s10 }
  0x5e   :  { %v3028_v6 = vcombine.high %v163_v3, %v167_v4  ;;  %v3027_v9 = vcombine.low %v163_v3, %v167_v4  ;;  %v171_v10 = vld [vmem:[#allocation7 + $0x40] sm:$0xff]  ;;  %v3029_v11 = vcombine.low %v164_v7, %v168_v8  ;;  %v3030_v12 = vcombine.high %v164_v7, %v168_v8  ;;  %v172_v14 = vld [vmem:[#allocation7 + $0x48] sm:$0xff]  ;;  %v165_v4 = vld [vmem:[#allocation7 + $0x10] sm:$0xff]  ;;  %s4002_s13 = scalar_lea.vmem %s3014_s10, 128  ;;  %p4007_p13 = scmp.lt.s32.totalorder %s3014_s10, %s3014_s10 }
  0x5f   :  { %v175_v13 = vld [vmem:[#allocation7 + $0x60] sm:$0xff]  ;;  %v176_v15 = vld [vmem:[#allocation7 + $0x68] sm:$0xff]  ;;  %v170_v8 = vld [vmem:[#allocation7 + $0x38] sm:$0xff]  ;;  %p4003_p12 = scmp.ne.s32.totalorder %s3014_s10, %s4002_s13  ;;  %p4008_p0 = scmp.lt.s32.totalorder %s4002_s13, %s4002_s13 }
  0x60   :  { %589 = vmatprep.subr.bf16.mxu1 %v3028_v6  ;;  %v3036_v16 = vcombine.high %v171_v10, %v175_v13  ;;  %v3038_v17 = vcombine.high %v172_v14, %v176_v15  ;;  %v179_v18 = vld [vmem:[#allocation7 + $0x80] sm:$0xff]  ;;  %v180_v20 = vld [vmem:[#allocation7 + $0x88] sm:$0xff]  ;;  %3429 = vmatmul.mubr.msk.bf16.vlgmr.msra.gmra.mrb[0].mxu0 %vm117_vm1, %v101_v5  ;;  %v3037_v22 = vcombine.low %v172_v14, %v176_v15  ;;  %v169_v5 = vld [vmem:[#allocation7 + $0x30] sm:$0xff] }
  0x61   :  { %v183_v19 = vld [vmem:[#allocation7 + $0xa0] sm:$0xff]  ;;  %630 = vmatprep.subr.bf16.mxu0 %v3030_v12  ;;  %v184_v21 = vld [vmem:[#allocation7 + $0xa8] sm:$0xff]  ;;  %590 = vmatpush1.bf16.msra.mxu1 %v3027_v9  ;;  %v3035_v23 = vcombine.low %v171_v10, %v175_v13  ;;  %v166_v6 = vld [vmem:[#allocation7 + $0x18] sm:$0xff]  ;;  %v3032_v7 = vcombine.high %v165_v4, %v169_v5  ;;  %v3031_v9 = vcombine.low %v165_v4, %v169_v5  ;;  %v4045_v12 = vmov 0   ;;  %p4009_p1 = por %p4008_p0, %p4007_p13 }
  0x62   :  { %631 = vmatpush1.bf16.msra.mxu0 %v3029_v11  ;;  %591 = vmatprep.subr.bf16.mxu1 %v3036_v16  ;;  %v3044_v24 = vcombine.high %v179_v18, %v183_v19  ;;  %v3046_v25 = vcombine.high %v180_v20, %v184_v21  ;;  %v187_v26 = vld [vmem:[#allocation7 + $0xc0] sm:$0xff]  ;;  %v188_v28 = vld [vmem:[#allocation7 + $0xc8] sm:$0xff]  ;;  %v3045_v30 = vcombine.low %v180_v20, %v184_v21  ;;  %v3024_v13 = vld [vmem:[%s4254_s2] ss:$0 sm:$0xff] }
  0x63   :  { %632 = vmatprep.subr.bf16.mxu0 %v3038_v17  ;;  %v191_v27 = vld [vmem:[#allocation7 + $0xe0] sm:$0xff]  ;;  %v192_v29 = vld [vmem:[#allocation7 + $0xe8] sm:$0xff]  ;;  %v3043_v31 = vcombine.low %v179_v18, %v183_v19  ;;  %v3033_v10 = vcombine.low %v166_v6, %v170_v8  ;;  %v3034_v11 = vcombine.high %v166_v6, %v170_v8  ;;  %621 = vmatprep.mubr.bf16.mxu1 %v4045_v12  ;;  %v173_v17 = vld [vmem:[#allocation7 + $0x50] sm:$0xff]  ;;  %p4010_p2 = pnand %p4009_p1, %p4003_p12 }
  0x64   :  { %v195_v32 = vld [vmem:[#allocation7 + $0x100] sm:$0xff]  ;;  %v196_v34 = vld [vmem:[#allocation7 + $0x108] sm:$0xff]  ;;  %v3052_v36 = vcombine.high %v187_v26, %v191_v27  ;;  %v3054_v37 = vcombine.high %v188_v28, %v192_v29  ;;  %v3053_v38 = vcombine.low %v188_v28, %v192_v29  ;;  %v3051_v39 = vcombine.low %v187_v26, %v191_v27  ;;  %662 = vmatprep.mubr.bf16.mxu0 %v4045_v12  ;;  %v177_v19 = vld [vmem:[#allocation7 + $0x70] sm:$0xff] }
  0x65   :  { %592 = vmatpush1.bf16.msra.mxu1 %v3035_v23  ;;  %v199_v33 = vld [vmem:[#allocation7 + $0x120] sm:$0xff]  ;;  %v200_v35 = vld [vmem:[#allocation7 + $0x128] sm:$0xff]  ;;  %v174_v20 = vld [vmem:[#allocation7 + $0x58] sm:$0xff] }
  0x66   :  { %633 = vmatpush1.bf16.msra.mxu0 %v3037_v22  ;;  %593 = vmatprep.subr.bf16.mxu1 %v3044_v24  ;;  %v203_v40 = vld [vmem:[#allocation7 + $0x140] sm:$0xff]  ;;  %v204_v42 = vld [vmem:[#allocation7 + $0x148] sm:$0xff]  ;;  %v3060_v44 = vcombine.high %v195_v32, %v199_v33  ;;  %v3062_v45 = vcombine.high %v196_v34, %v200_v35  ;;  %v3061_v46 = vcombine.low %v196_v34, %v200_v35  ;;  %v178_v21 = vld [vmem:[#allocation7 + $0x78] sm:$0xff] }
  0x67   :  { %634 = vmatprep.subr.bf16.mxu0 %v3046_v25  ;;  %v207_v41 = vld [vmem:[#allocation7 + $0x160] sm:$0xff]  ;;  %v208_v43 = vld [vmem:[#allocation7 + $0x168] sm:$0xff]  ;;  %v3059_v47 = vcombine.low %v195_v32, %v199_v33  ;;  %v3040_v25 = vcombine.high %v173_v17, %v177_v19  ;;  %v3042_v26 = vcombine.high %v174_v20, %v178_v21  ;;  %v181_v27 = vld [vmem:[#allocation7 + $0x90] sm:$0xff]  ;;  %v3041_v32 = vcombine.low %v174_v20, %v178_v21 }
  0x68   :  { %v211_v48 = vld [vmem:[#allocation7 + $0x180] sm:$0xff]  ;;  %v212_v50 = vld [vmem:[#allocation7 + $0x188] sm:$0xff]  ;;  %v3068_v52 = vcombine.high %v203_v40, %v207_v41  ;;  %v3070_v53 = vcombine.high %v204_v42, %v208_v43  ;;  %v3069_v54 = vcombine.low %v204_v42, %v208_v43  ;;  %v3067_v55 = vcombine.low %v203_v40, %v207_v41  ;;  %v185_v28 = vld [vmem:[#allocation7 + $0xb0] sm:$0xff] }
  0x69   :  { %594 = vmatpush1.bf16.msra.mxu1 %v3043_v31  ;;  %v215_v49 = vld [vmem:[#allocation7 + $0x1a0] sm:$0xff]  ;;  %v216_v51 = vld [vmem:[#allocation7 + $0x1a8] sm:$0xff]  ;;  %v182_v29 = vld [vmem:[#allocation7 + $0x98] sm:$0xff]  ;;  %v3039_v31 = vcombine.low %v173_v17, %v177_v19  ;;  %v3048_v33 = vcombine.high %v181_v27, %v185_v28 }
  0x6a   :  { %635 = vmatpush1.bf16.msra.mxu0 %v3045_v30  ;;  %595 = vmatprep.subr.bf16.mxu1 %v3052_v36  ;;  %v3076_v56 = vcombine.high %v211_v48, %v215_v49  ;;  %v3078_v57 = vcombine.high %v212_v50, %v216_v51  ;;  %v3077_v58 = vcombine.low %v212_v50, %v216_v51  ;;  %v219_v60 = vld [vmem:[#allocation7 + $0x1c0] sm:$0xff]  ;;  %v220_v62 = vld [vmem:[#allocation7 + $0x1c8] sm:$0xff]  ;;  %v186_v30 = vld [vmem:[#allocation7 + $0xb8] sm:$0xff] }
  0x6b   :  { %636 = vmatprep.subr.bf16.mxu0 %v3054_v37  ;;  %v3075_v59 = vcombine.low %v211_v48, %v215_v49  ;;  %v223_v61 = vld [vmem:[#allocation7 + $0x1e0] sm:$0xff]  ;;  %v224_v0 = vld [vmem:[#allocation7 + $0x1e8] sm:$0xff]  ;;  %v3050_v34 = vcombine.high %v182_v29, %v186_v30  ;;  %v189_v35 = vld [vmem:[#allocation7 + $0xd0] sm:$0xff]  ;;  %v3049_v40 = vcombine.low %v182_v29, %v186_v30 }
  0x6c   :  { %v3084_v63 = vcombine.high %v219_v60, %v223_v61  ;;  %v3085_v1 = vcombine.low %v220_v62, %v224_v0  ;;  %v3086_v2 = vcombine.high %v220_v62, %v224_v0  ;;  %v3083_v3 = vcombine.low %v219_v60, %v223_v61  ;;  %v193_v36 = vld [vmem:[#allocation7 + $0xf0] sm:$0xff]  ;;  %v190_v37 = vld [vmem:[#allocation7 + $0xd8] sm:$0xff] }
  0x6d   :  { %596 = vmatpush1.bf16.msra.mxu1 %v3051_v39  ;;  %v3047_v39 = vcombine.low %v181_v27, %v185_v28  ;;  %v3056_v41 = vcombine.high %v189_v35, %v193_v36  ;;  %v197_v43 = vld [vmem:[#allocation7 + $0x110] sm:$0xff]  ;;  %v214_v61 = vld [vmem:[#allocation7 + $0x198] sm:$0xff] }
  0x6e   :  { %637 = vmatpush1.bf16.msra.mxu0 %v3053_v38  ;;  %597 = vmatprep.subr.bf16.mxu1 %v3060_v44  ;;  %v194_v38 = vld [vmem:[#allocation7 + $0xf8] sm:$0xff]  ;;  %v201_v44 = vld [vmem:[#allocation7 + $0x130] sm:$0xff] }
  0x6f   :  { %638 = vmatprep.subr.bf16.mxu0 %v3062_v45  ;;  %v3058_v42 = vcombine.high %v190_v37, %v194_v38  ;;  %v198_v45 = vld [vmem:[#allocation7 + $0x118] sm:$0xff]  ;;  %v3057_v48 = vcombine.low %v190_v37, %v194_v38  ;;  %v3064_v49 = vcombine.high %v197_v43, %v201_v44  ;;  %v205_v51 = vld [vmem:[#allocation7 + $0x150] sm:$0xff] }
  0x70   :  { %v217_v60 = vld [vmem:[#allocation7 + $0x1b0] sm:$0xff]  ;;  %v218_v62 = vld [vmem:[#allocation7 + $0x1b8] sm:$0xff] }
  0x71   :  { %598 = vmatpush1.bf16.msra.mxu1 %v3059_v47  ;;  %v3055_v47 = vcombine.low %v189_v35, %v193_v36  ;;  %v225_v4 = vld [vmem:[#allocation7 + $0x1f0] sm:$0xff]  ;;  %v222_v5 = vld [vmem:[#allocation7 + $0x1d8] sm:$0xff]  ;;  %v3081_v8 = vcombine.low %v214_v61, %v218_v62 }
  0x72   :  { %639 = vmatpush1.bf16.msra.mxu0 %v3061_v46  ;;  %599 = vmatprep.subr.bf16.mxu1 %v3068_v52  ;;  %v202_v46 = vld [vmem:[#allocation7 + $0x138] sm:$0xff]  ;;  %v209_v52 = vld [vmem:[#allocation7 + $0x170] sm:$0xff] }
  0x73   :  { %640 = vmatprep.subr.bf16.mxu0 %v3070_v53  ;;  %v3066_v50 = vcombine.high %v198_v45, %v202_v46  ;;  %v206_v53 = vld [vmem:[#allocation7 + $0x158] sm:$0xff]  ;;  %v3484_v17 = vld [vmem:[#allocation8 + $0x24] ss:$16 sps:$4 sm:$0xff]   ;;  %v3482_v19 = vld [vmem:[#allocation8 + $0x20] ss:$16 sps:$4 sm:$0xff]  }
  0x74   :  { %v226_v6 = vld [vmem:[#allocation7 + $0x1f8] sm:$0xff]  ;;  %v3490_v21 = vld [vmem:[#allocation8 + $0x44] ss:$16 sps:$4 sm:$0xff]   ;;  %v3494_v28 = vld [vmem:[#allocation8 + $0x60] ss:$16 sps:$4 sm:$0xff]  }
  0x75   :  { %600 = vmatpush1.bf16.msra.mxu1 %v3067_v55  ;;  %v3063_v55 = vcombine.low %v197_v43, %v201_v44  ;;  %v3485_v20 = vld [vmem:[#allocation8 + $0x28] ss:$16 sps:$4 sm:$0xff]   ;;  %v3499_v27 = vld [vmem:[#allocation8 + $0x6c] ss:$16 sps:$4 sm:$0xff]   ;;  %v3502_v29 = vld [vmem:[#allocation8 + $0x84] ss:$16 sps:$4 sm:$0xff]  }
  0x76   :  { %641 = vmatpush1.bf16.msra.mxu0 %v3069_v54  ;;  %601 = vmatprep.subr.bf16.mxu1 %v3076_v56  ;;  %v210_v54 = vld [vmem:[#allocation7 + $0x178] sm:$0xff]  ;;  %v3065_v56 = vcombine.low %v198_v45, %v202_v46  ;;  %v3506_v35 = vld [vmem:[#allocation8 + $0xa0] ss:$16 sps:$4 sm:$0xff]   ;;  %v3514_v37 = vld [vmem:[#allocation8 + $0xc4] ss:$16 sps:$4 sm:$0xff]  }
  0x77   :  { %642 = vmatprep.subr.bf16.mxu0 %v3078_v57  ;;  %v3072_v57 = vcombine.high %v205_v51, %v209_v52  ;;  %v3073_v0 = vcombine.low %v206_v53, %v210_v54  ;;  %v3505_v30 = vld [vmem:[#allocation8 + $0x8c] ss:$16 sps:$4 sm:$0xff]   ;;  %v3509_v36 = vld [vmem:[#allocation8 + $0xa8] ss:$16 sps:$4 sm:$0xff]   ;;  %v3518_v43 = vld [vmem:[#allocation8 + $0xe0] ss:$16 sps:$4 sm:$0xff]  }
  0x78   :  { %v3517_v38 = vld [vmem:[#allocation8 + $0xcc] ss:$16 sps:$4 sm:$0xff]   ;;  %v3521_v44 = vld [vmem:[#allocation8 + $0xe8] ss:$16 sps:$4 sm:$0xff]   ;;  %v3526_v45 = vld [vmem:[#allocation8 + $0x104] ss:$16 sps:$4 sm:$0xff]  }
  0x79   :  { %602 = vmatpush1.bf16.msra.mxu1 %v3075_v59  ;;  %v213_v59 = vld [vmem:[#allocation7 + $0x190] sm:$0xff]  ;;  %v3529_v46 = vld [vmem:[#allocation8 + $0x10c] ss:$16 sps:$4 sm:$0xff]  }
  0x7a   :  { %643 = vmatpush1.bf16.msra.mxu0 %v3077_v58  ;;  %603 = vmatprep.subr.bf16.mxu1 %v3084_v63  ;;  %v3074_v58 = vcombine.high %v206_v53, %v210_v54  ;;  %v3071_v63 = vcombine.low %v205_v51, %v209_v52  ;;  %v3530_v51 = vld [vmem:[#allocation8 + $0x120] ss:$16 sps:$4 sm:$0xff]   ;;  %v3533_v52 = vld [vmem:[#allocation8 + $0x128] ss:$16 sps:$4 sm:$0xff]   ;;  %v3538_v53 = vld [vmem:[#allocation8 + $0x144] ss:$16 sps:$4 sm:$0xff]  }
  0x7b   :  { %644 = vmatprep.subr.bf16.mxu0 %v3086_v2  ;;  %v3082_v2 = vcombine.high %v214_v61, %v218_v62  ;;  %v3541_v54 = vld [vmem:[#allocation8 + $0x14c] ss:$16 sps:$4 sm:$0xff]   ;;  %v3550_v61 = vld [vmem:[#allocation8 + $0x184] ss:$16 sps:$4 sm:$0xff]  }
  0x7c   :  { %v3553_v62 = vld [vmem:[#allocation8 + $0x18c] ss:$16 sps:$4 sm:$0xff]  }
  0x7d   :  { %604 = vmatpush1.bf16.msra.mxu1 %v3083_v3  ;;  %v221_v3 = vld [vmem:[#allocation7 + $0x1d0] sm:$0xff] }
  0x7e   :  { %645 = vmatpush1.bf16.msra.mxu0 %v3085_v1  ;;  %671 = vmatprep.subr.bf16.mxu1 %v3032_v7  ;;  %v3080_v1 = vcombine.high %v213_v59, %v217_v60  ;;  %v3079_v7 = vcombine.low %v213_v59, %v217_v60  ;;  %v3542_v59 = vld [vmem:[#allocation8 + $0x160] ss:$16 sps:$4 sm:$0xff]   ;;  %v3545_v60 = vld [vmem:[#allocation8 + $0x168] ss:$16 sps:$4 sm:$0xff]  }
  0x7f   :  { %712 = vmatprep.subr.bf16.mxu0 %v3034_v11  ;;  %v3087_v11 = vcombine.low %v221_v3, %v225_v4 }
 0x133   :  { %v155_v14 = vpop.f32.mrb[0].mxu0 }
 0x134   :  { %v156_v15 = vadd.f32 %v3024_v13, %v155_v14  ;;  %v3430_v16 = vpop.f32.mrb[1].mxu0  ;;  %v3478_v13 = vld [vmem:[#allocation8 + $0x4] ss:$16 sps:$4 sm:$0xff]   ;;  %v3481_v14 = vld [vmem:[#allocation8 + $0xc] ss:$16 sps:$4 sm:$0xff]  }
 0x135   :  { %v158_v18 = vpop.f32.mrb[2].mxu0  ;;  %v3479_v16 = vld [vmem:[#allocation8 + $0x8] ss:$16 sps:$4 sm:$0xff]  }
 0x136   :  { %v161_v22 = vmax.f32 %v156_v15, 0.0  ;;  %v3431_v23 = vpop.f32.mrb[3].mxu0  ;;  %v3476_v15 = vld [vmem:[#allocation8] ss:$16 sps:$4 sm:$0xff]   ;;  %v3487_v18 = vld [vmem:[#allocation8 + $0x2c] ss:$16 sps:$4 sm:$0xff]  }
 0x137   :  { %v3488_v23 = vld [vmem:[#allocation8 + $0x40] ss:$16 sps:$4 sm:$0xff]  }
 0x138   :  { %v4174_v24 = vpack.c.bf16 %v161_v22, %v161_v22  ;;  %v3493_v22 = vld [vmem:[#allocation8 + $0x4c] ss:$16 sps:$4 sm:$0xff]  }
 0x13a   :  { %622 = vmatmul.mubr.bf16.vlgmr.msra.gmra.mrb[0].mxu1 %v4174_v24  ;;  %663 = vmatmul.mubr.bf16.vlgmr.msra.gmra.mrb[4].mxu0 %v4174_v24 }
 0x13b   :  { %672 = vmatpush1.bf16.msra.mxu1 %v3031_v9  ;;  %713 = vmatpush1.bf16.msra.mxu0 %v3033_v10  ;;  %v3088_v9 = vcombine.high %v221_v3, %v225_v4  ;;  %v3090_v10 = vcombine.high %v222_v5, %v226_v6  ;;  %v3554_v3 = vld [vmem:[#allocation8 + $0x1a0] ss:$16 sps:$4 sm:$0xff]   ;;  %v3557_v4 = vld [vmem:[#allocation8 + $0x1a8] ss:$16 sps:$4 sm:$0xff]  }
 0x13c   :  { %673 = vmatprep.subr.bf16.mxu1 %v3040_v25  ;;  %714 = vmatprep.subr.bf16.mxu0 %v3042_v26  ;;  %v3491_v25 = vld [vmem:[#allocation8 + $0x48] ss:$16 sps:$4 sm:$0xff]   ;;  %v3496_v26 = vld [vmem:[#allocation8 + $0x64] ss:$16 sps:$4 sm:$0xff]  }
 0x13d   :  { %703 = vmatprep.mubr.bf16.mxu1 %v4045_v12  ;;  %744 = vmatprep.mubr.bf16.mxu0 %v4045_v12  ;;  %v3089_v12 = vcombine.low %v222_v5, %v226_v6  ;;  %v3562_v5 = vld [vmem:[#allocation8 + $0x1c4] ss:$16 sps:$4 sm:$0xff]   ;;  %v3565_v6 = vld [vmem:[#allocation8 + $0x1cc] ss:$16 sps:$4 sm:$0xff]  }
 0x13f   :  { %674 = vmatpush1.bf16.msra.mxu1 %v3039_v31  ;;  %715 = vmatpush1.bf16.msra.mxu0 %v3041_v32  ;;  %v3500_v31 = vld [vmem:[#allocation8 + $0x80] ss:$16 sps:$4 sm:$0xff]   ;;  %v3503_v32 = vld [vmem:[#allocation8 + $0x88] ss:$16 sps:$4 sm:$0xff]  }
 0x140   :  { %675 = vmatprep.subr.bf16.mxu1 %v3048_v33  ;;  %716 = vmatprep.subr.bf16.mxu0 %v3050_v34  ;;  %v3508_v33 = vld [vmem:[#allocation8 + $0xa4] ss:$16 sps:$4 sm:$0xff]   ;;  %v3511_v34 = vld [vmem:[#allocation8 + $0xac] ss:$16 sps:$4 sm:$0xff]  }
 0x143   :  { %676 = vmatpush1.bf16.msra.mxu1 %v3047_v39  ;;  %717 = vmatpush1.bf16.msra.mxu0 %v3049_v40  ;;  %v3512_v39 = vld [vmem:[#allocation8 + $0xc0] ss:$16 sps:$4 sm:$0xff]   ;;  %v3515_v40 = vld [vmem:[#allocation8 + $0xc8] ss:$16 sps:$4 sm:$0xff]  }
 0x144   :  { %677 = vmatprep.subr.bf16.mxu1 %v3056_v41  ;;  %718 = vmatprep.subr.bf16.mxu0 %v3058_v42  ;;  %v3520_v41 = vld [vmem:[#allocation8 + $0xe4] ss:$16 sps:$4 sm:$0xff]   ;;  %v3523_v42 = vld [vmem:[#allocation8 + $0xec] ss:$16 sps:$4 sm:$0xff]  }
 0x147   :  { %678 = vmatpush1.bf16.msra.mxu1 %v3055_v47  ;;  %719 = vmatpush1.bf16.msra.mxu0 %v3057_v48  ;;  %v3524_v47 = vld [vmem:[#allocation8 + $0x100] ss:$16 sps:$4 sm:$0xff]   ;;  %v3527_v48 = vld [vmem:[#allocation8 + $0x108] ss:$16 sps:$4 sm:$0xff]  }
 0x148   :  { %679 = vmatprep.subr.bf16.mxu1 %v3064_v49  ;;  %720 = vmatprep.subr.bf16.mxu0 %v3066_v50  ;;  %v3532_v49 = vld [vmem:[#allocation8 + $0x124] ss:$16 sps:$4 sm:$0xff]   ;;  %v3535_v50 = vld [vmem:[#allocation8 + $0x12c] ss:$16 sps:$4 sm:$0xff]  }
 0x14b   :  { %680 = vmatpush1.bf16.msra.mxu1 %v3063_v55  ;;  %721 = vmatpush1.bf16.msra.mxu0 %v3065_v56  ;;  %v3536_v55 = vld [vmem:[#allocation8 + $0x140] ss:$16 sps:$4 sm:$0xff]   ;;  %v3539_v56 = vld [vmem:[#allocation8 + $0x148] ss:$16 sps:$4 sm:$0xff]  }
 0x14c   :  { %681 = vmatprep.subr.bf16.mxu1 %v3072_v57  ;;  %722 = vmatprep.subr.bf16.mxu0 %v3074_v58  ;;  %v3544_v57 = vld [vmem:[#allocation8 + $0x164] ss:$16 sps:$4 sm:$0xff]   ;;  %v3547_v58 = vld [vmem:[#allocation8 + $0x16c] ss:$16 sps:$4 sm:$0xff]  }
 0x14f   :  { %682 = vmatpush1.bf16.msra.mxu1 %v3071_v63  ;;  %723 = vmatpush1.bf16.msra.mxu0 %v3073_v0  ;;  %v3548_v63 = vld [vmem:[#allocation8 + $0x180] ss:$16 sps:$4 sm:$0xff]   ;;  %v3551_v0 = vld [vmem:[#allocation8 + $0x188] ss:$16 sps:$4 sm:$0xff]  }
 0x150   :  { %683 = vmatprep.subr.bf16.mxu1 %v3080_v1  ;;  %724 = vmatprep.subr.bf16.mxu0 %v3082_v2  ;;  %v3556_v1 = vld [vmem:[#allocation8 + $0x1a4] ss:$16 sps:$4 sm:$0xff]   ;;  %v3559_v2 = vld [vmem:[#allocation8 + $0x1ac] ss:$16 sps:$4 sm:$0xff]  }
 0x153   :  { %684 = vmatpush1.bf16.msra.mxu1 %v3079_v7  ;;  %725 = vmatpush1.bf16.msra.mxu0 %v3081_v8  ;;  %v3560_v7 = vld [vmem:[#allocation8 + $0x1c0] ss:$16 sps:$4 sm:$0xff]   ;;  %v3563_v8 = vld [vmem:[#allocation8 + $0x1c8] ss:$16 sps:$4 sm:$0xff]  }
 0x154   :  { %685 = vmatprep.subr.bf16.mxu1 %v3088_v9  ;;  %726 = vmatprep.subr.bf16.mxu0 %v3090_v10  ;;  %v3568_v9 = vld [vmem:[#allocation8 + $0x1e4] ss:$16 sps:$4 sm:$0xff]   ;;  %v3571_v10 = vld [vmem:[#allocation8 + $0x1ec] ss:$16 sps:$4 sm:$0xff]  }
 0x157   :  { %686 = vmatpush1.bf16.msra.mxu1 %v3087_v11  ;;  %727 = vmatpush1.bf16.msra.mxu0 %v3089_v12  ;;  %v3566_v11 = vld [vmem:[#allocation8 + $0x1e0] ss:$16 sps:$4 sm:$0xff]   ;;  %v3569_v12 = vld [vmem:[#allocation8 + $0x1e8] ss:$16 sps:$4 sm:$0xff]  }
 0x158   :  { %2327 = vmatprep.subr.bf16.mxu1 %v3478_v13  ;;  %2491 = vmatprep.subr.bf16.mxu0 %v3481_v14  ;;  %v3574_v13 = vld [vmem:[#allocation8 + $0x204] ss:$16 sps:$4 sm:$0xff]   ;;  %v3577_v14 = vld [vmem:[#allocation8 + $0x20c] ss:$16 sps:$4 sm:$0xff]  }
 0x15a   :  { %704 = vmatmul.mubr.bf16.vlgmr.msra.gmra.mrb[4].mxu1 %v4174_v24  ;;  %745 = vmatmul.mubr.bf16.vlgmr.msra.gmra.mrb[8].mxu0 %v4174_v24  ;;  %v3497_v24 = vld [vmem:[#allocation8 + $0x68] ss:$16 sps:$4 sm:$0xff]  }
 0x15b   :  { %2328 = vmatpush1.bf16.msra.mxu1 %v3476_v15  ;;  %2492 = vmatpush1.bf16.msra.mxu0 %v3479_v16  ;;  %v229_v15 = vlaneseq }
 0x15c   :  { %2329 = vmatprep.subr.bf16.mxu1 %v3484_v17  ;;  %2493 = vmatprep.subr.bf16.mxu0 %v3487_v18  ;;  %v4186_v18 = vld [vmem:[%s4256_s4] sm:$0xff] }
 0x15d   :  { %v4180_v16 = vshrl.u32 %v229_v15, 7  ;;  %v3622_v15 = vld [vmem:[#allocation8 + $0x304] ss:$16 sps:$4 sm:$0xff]  }
 0x15f   :  { %2330 = vmatpush1.bf16.msra.mxu1 %v3482_v19  ;;  %2494 = vmatpush1.bf16.msra.mxu0 %v3485_v20  ;;  %v231_v17 = vsub.s32 0, %v4180_v16  ;;  %v235_v19 = vsub.s32 1, %v4180_v16  ;;  %v243_v20 = vsub.s32 3, %v4180_v16 }
 0x160   :  { %2331 = vmatprep.subr.bf16.mxu1 %v3490_v21  ;;  %2495 = vmatprep.subr.bf16.mxu0 %v3493_v22 }
 0x161   :  { %v232_v21 = vrot.slane %v4186_v18, %v231_v17  ;;  %v236_v22 = vrot.slane %v4186_v18, %v235_v19 }
 0x163   :  { %2332 = vmatpush1.bf16.msra.mxu1 %v3488_v23  ;;  %2496 = vmatpush1.bf16.msra.mxu0 %v3491_v25  ;;  %v244_v23 = vrot.slane %v4186_v18, %v243_v20 }
 0x164   :  { %2333 = vmatprep.subr.bf16.mxu1 %v3496_v26  ;;  %2497 = vmatprep.subr.bf16.mxu0 %v3499_v27 }
 0x167   :  { %2334 = vmatpush1.bf16.msra.mxu1 %v3494_v28  ;;  %2498 = vmatpush1.bf16.msra.mxu0 %v3497_v24 }
 0x168   :  { %2335 = vmatprep.subr.bf16.mxu1 %v3502_v29  ;;  %2499 = vmatprep.subr.bf16.mxu0 %v3505_v30 }
 0x16b   :  { %2336 = vmatpush1.bf16.msra.mxu1 %v3500_v31  ;;  %2500 = vmatpush1.bf16.msra.mxu0 %v3503_v32 }
 0x16c   :  { %2337 = vmatprep.subr.bf16.mxu1 %v3508_v33  ;;  %2501 = vmatprep.subr.bf16.mxu0 %v3511_v34 }
 0x16f   :  { %2338 = vmatpush1.bf16.msra.mxu1 %v3506_v35  ;;  %2502 = vmatpush1.bf16.msra.mxu0 %v3509_v36 }
 0x170   :  { %2339 = vmatprep.subr.bf16.mxu1 %v3514_v37  ;;  %2503 = vmatprep.subr.bf16.mxu0 %v3517_v38 }
 0x173   :  { %2340 = vmatpush1.bf16.msra.mxu1 %v3512_v39  ;;  %2504 = vmatpush1.bf16.msra.mxu0 %v3515_v40  ;;  %v3572_v39 = vld [vmem:[#allocation8 + $0x200] ss:$16 sps:$4 sm:$0xff]   ;;  %v3575_v40 = vld [vmem:[#allocation8 + $0x208] ss:$16 sps:$4 sm:$0xff]  }
 0x174   :  { %2341 = vmatprep.subr.bf16.mxu1 %v3520_v41  ;;  %2505 = vmatprep.subr.bf16.mxu0 %v3523_v42  ;;  %v3580_v42 = vld [vmem:[#allocation8 + $0x224] ss:$16 sps:$4 sm:$0xff]  }
 0x177   :  { %2342 = vmatpush1.bf16.msra.mxu1 %v3518_v43  ;;  %2506 = vmatpush1.bf16.msra.mxu0 %v3521_v44  ;;  %v3583_v43 = vld [vmem:[#allocation8 + $0x22c] ss:$16 sps:$4 sm:$0xff]  }
 0x178   :  { %2343 = vmatprep.subr.bf16.mxu1 %v3526_v45  ;;  %2507 = vmatprep.subr.bf16.mxu0 %v3529_v46  ;;  %v3578_v45 = vld [vmem:[#allocation8 + $0x220] ss:$16 sps:$4 sm:$0xff]   ;;  %v3581_v46 = vld [vmem:[#allocation8 + $0x228] ss:$16 sps:$4 sm:$0xff]  }
 0x17b   :  { %2344 = vmatpush1.bf16.msra.mxu1 %v3524_v47  ;;  %2508 = vmatpush1.bf16.msra.mxu0 %v3527_v48  ;;  %v3586_v47 = vld [vmem:[#allocation8 + $0x244] ss:$16 sps:$4 sm:$0xff]   ;;  %v3589_v48 = vld [vmem:[#allocation8 + $0x24c] ss:$16 sps:$4 sm:$0xff]  }
 0x17c   :  { %2345 = vmatprep.subr.bf16.mxu1 %v3532_v49  ;;  %2509 = vmatprep.subr.bf16.mxu0 %v3535_v50  ;;  %v3584_v49 = vld [vmem:[#allocation8 + $0x240] ss:$16 sps:$4 sm:$0xff]   ;;  %v3587_v50 = vld [vmem:[#allocation8 + $0x248] ss:$16 sps:$4 sm:$0xff]  }
 0x17f   :  { %2346 = vmatpush1.bf16.msra.mxu1 %v3530_v51  ;;  %2510 = vmatpush1.bf16.msra.mxu0 %v3533_v52  ;;  %v3592_v51 = vld [vmem:[#allocation8 + $0x264] ss:$16 sps:$4 sm:$0xff]   ;;  %v3595_v52 = vld [vmem:[#allocation8 + $0x26c] ss:$16 sps:$4 sm:$0xff]  }
 0x180   :  { %2347 = vmatprep.subr.bf16.mxu1 %v3538_v53  ;;  %2511 = vmatprep.subr.bf16.mxu0 %v3541_v54  ;;  %v3590_v53 = vld [vmem:[#allocation8 + $0x260] ss:$16 sps:$4 sm:$0xff]   ;;  %v3593_v54 = vld [vmem:[#allocation8 + $0x268] ss:$16 sps:$4 sm:$0xff]  }
 0x183   :  { %2348 = vmatpush1.bf16.msra.mxu1 %v3536_v55  ;;  %2512 = vmatpush1.bf16.msra.mxu0 %v3539_v56  ;;  %v3598_v55 = vld [vmem:[#allocation8 + $0x284] ss:$16 sps:$4 sm:$0xff]   ;;  %v3601_v56 = vld [vmem:[#allocation8 + $0x28c] ss:$16 sps:$4 sm:$0xff]  }
 0x184   :  { %2349 = vmatprep.subr.bf16.mxu1 %v3544_v57  ;;  %2513 = vmatprep.subr.bf16.mxu0 %v3547_v58  ;;  %v3596_v57 = vld [vmem:[#allocation8 + $0x280] ss:$16 sps:$4 sm:$0xff]   ;;  %v3599_v58 = vld [vmem:[#allocation8 + $0x288] ss:$16 sps:$4 sm:$0xff]  }
 0x187   :  { %2350 = vmatpush1.bf16.msra.mxu1 %v3542_v59  ;;  %2514 = vmatpush1.bf16.msra.mxu0 %v3545_v60  ;;  %v3604_v59 = vld [vmem:[#allocation8 + $0x2a4] ss:$16 sps:$4 sm:$0xff]   ;;  %v3607_v60 = vld [vmem:[#allocation8 + $0x2ac] ss:$16 sps:$4 sm:$0xff]  }
 0x188   :  { %2351 = vmatprep.subr.bf16.mxu1 %v3550_v61  ;;  %2515 = vmatprep.subr.bf16.mxu0 %v3553_v62  ;;  %v3602_v61 = vld [vmem:[#allocation8 + $0x2a0] ss:$16 sps:$4 sm:$0xff]   ;;  %v3605_v62 = vld [vmem:[#allocation8 + $0x2a8] ss:$16 sps:$4 sm:$0xff]  }
 0x18b   :  { %2352 = vmatpush1.bf16.msra.mxu1 %v3548_v63  ;;  %2516 = vmatpush1.bf16.msra.mxu0 %v3551_v0  ;;  %v3610_v63 = vld [vmem:[#allocation8 + $0x2c4] ss:$16 sps:$4 sm:$0xff]   ;;  %v3613_v0 = vld [vmem:[#allocation8 + $0x2cc] ss:$16 sps:$4 sm:$0xff]  }
 0x18c   :  { %2353 = vmatprep.subr.bf16.mxu1 %v3556_v1  ;;  %2517 = vmatprep.subr.bf16.mxu0 %v3559_v2  ;;  %v3608_v1 = vld [vmem:[#allocation8 + $0x2c0] ss:$16 sps:$4 sm:$0xff]   ;;  %v3611_v2 = vld [vmem:[#allocation8 + $0x2c8] ss:$16 sps:$4 sm:$0xff]  }
 0x18f   :  { %2354 = vmatpush1.bf16.msra.mxu1 %v3554_v3  ;;  %2518 = vmatpush1.bf16.msra.mxu0 %v3557_v4  ;;  %v3616_v3 = vld [vmem:[#allocation8 + $0x2e4] ss:$16 sps:$4 sm:$0xff]   ;;  %v3619_v4 = vld [vmem:[#allocation8 + $0x2ec] ss:$16 sps:$4 sm:$0xff]  }
 0x190   :  { %2355 = vmatprep.subr.bf16.mxu1 %v3562_v5  ;;  %2519 = vmatprep.subr.bf16.mxu0 %v3565_v6 }
 0x193   :  { %2356 = vmatpush1.bf16.msra.mxu1 %v3560_v7  ;;  %2520 = vmatpush1.bf16.msra.mxu0 %v3563_v8 }
 0x194   :  { %2357 = vmatprep.subr.bf16.mxu1 %v3568_v9  ;;  %2521 = vmatprep.subr.bf16.mxu0 %v3571_v10 }
 0x197   :  { %2358 = vmatpush1.bf16.msra.mxu1 %v3566_v11  ;;  %2522 = vmatpush1.bf16.msra.mxu0 %v3569_v12  ;;  %v3614_v11 = vld [vmem:[#allocation8 + $0x2e0] ss:$16 sps:$4 sm:$0xff]   ;;  %v3617_v12 = vld [vmem:[#allocation8 + $0x2e8] ss:$16 sps:$4 sm:$0xff]  }
 0x198   :  { %2368 = vmatprep.subr.bf16.mxu1 %v3574_v13  ;;  %2532 = vmatprep.subr.bf16.mxu0 %v3577_v14 }
 0x20d   :  { %v623_v25 = vpop.f32.mrb[0].mxu1  ;;  %v4199_v26 = vpop.f32.mrb[4].mxu0 }
 0x20e   :  { %v624_v27 = vadd.f32 %v623_v25, %v232_v21  ;;  %v625_v28 = vpop.f32.mrb[1].mxu1  ;;  %v666_v24 = vpop.f32.mrb[5].mxu0  ;;  %v3625_v21 = vld [vmem:[#allocation8 + $0x30c] ss:$16 sps:$4 sm:$0xff]   ;;  %v3628_v25 = vld [vmem:[#allocation8 + $0x324] ss:$16 sps:$4 sm:$0xff]  }
 0x20f   :  { %v626_v29 = vadd.f32 %v625_v28, %v236_v22  ;;  %v667_v30 = vadd.f32 %v666_v24, %v244_v23  ;;  %v627_v31 = vpop.f32.mrb[2].mxu1  ;;  %v668_v32 = vpop.f32.mrb[6].mxu0  ;;  %v3620_v22 = vld [vmem:[#allocation8 + $0x300] ss:$16 sps:$4 sm:$0xff]   ;;  %v3623_v23 = vld [vmem:[#allocation8 + $0x308] ss:$16 sps:$4 sm:$0xff]  }
 0x210   :  { %v753_v33 = vmax.f32 %v624_v27, 0.0  ;;  %v628_v34 = vpop.f32.mrb[3].mxu1  ;;  %v669_v35 = vpop.f32.mrb[7].mxu0  ;;  %v3631_v27 = vld [vmem:[#allocation8 + $0x32c] ss:$16 sps:$4 sm:$0xff]  }
 0x211   :  { %v754_v36 = vmax.f32 %v626_v29, 0.0  ;;  %v756_v37 = vmax.f32 %v667_v30, 0.0  ;;  %v3626_v28 = vld [vmem:[#allocation8 + $0x320] ss:$16 sps:$4 sm:$0xff]   ;;  %v3629_v24 = vld [vmem:[#allocation8 + $0x328] ss:$16 sps:$4 sm:$0xff]  }
 0x212   :  { %v761_v41 = vpack.c.bf16 %v753_v33, %v753_v33  ;;  %v3634_v29 = vld [vmem:[#allocation8 + $0x344] ss:$16 sps:$4 sm:$0xff]   ;;  %v3637_v30 = vld [vmem:[#allocation8 + $0x34c] ss:$16 sps:$4 sm:$0xff]   ;;  %v3632_v31 = vld [vmem:[#allocation8 + $0x340] ss:$16 sps:$4 sm:$0xff]  }
 0x213   :  { %v762_v38 = vpack.c.bf16 %v754_v36, %v754_v36  ;;  %v764_v44 = vpack.c.bf16 %v756_v37, %v756_v37  ;;  %v3635_v32 = vld [vmem:[#allocation8 + $0x348] ss:$16 sps:$4 sm:$0xff]   ;;  %v3640_v33 = vld [vmem:[#allocation8 + $0x364] ss:$16 sps:$4 sm:$0xff]   ;;  %v3643_v34 = vld [vmem:[#allocation8 + $0x36c] ss:$16 sps:$4 sm:$0xff]  }
 0x214   :  { %v3638_v35 = vld [vmem:[#allocation8 + $0x360] ss:$16 sps:$4 sm:$0xff]   ;;  %v3641_v36 = vld [vmem:[#allocation8 + $0x368] ss:$16 sps:$4 sm:$0xff]   ;;  %v3646_v37 = vld [vmem:[#allocation8 + $0x384] ss:$16 sps:$4 sm:$0xff]  }
 0x215   :  { %2359 = vmatprep.mubr.bf16.mxu1 %v762_v38  ;;  %2523 = vmatprep.mubr.bf16.mxu0 %v762_v38  ;;  %v3649_v38 = vld [vmem:[#allocation8 + $0x38c] ss:$16 sps:$4 sm:$0xff]  }
 0x216   :  { %2360 = vmatmul.mubr.bf16.vlgmr.msra.gmra.mrb[8].mxu1 %v761_v41  ;;  %2524 = vmatmul.mubr.bf16.vlgmr.msra.gmra.mrb[12].mxu0 %v761_v41  ;;  %v239_v41 = vsub.s32 2, %v4180_v16 }
 0x217   :  { %2369 = vmatpush1.bf16.msra.mxu1 %v3572_v39  ;;  %2533 = vmatpush1.bf16.msra.mxu0 %v3575_v40  ;;  %v3644_v39 = vld [vmem:[#allocation8 + $0x380] ss:$16 sps:$4 sm:$0xff]   ;;  %v3647_v40 = vld [vmem:[#allocation8 + $0x388] ss:$16 sps:$4 sm:$0xff]  }
 0x218   :  { %2400 = vmatprep.mubr.bf16.mxu1 %v764_v44  ;;  %2564 = vmatprep.mubr.bf16.mxu0 %v764_v44  ;;  %v251_v44 = vsub.s32 5, %v4180_v16 }
 0x219   :  { %2370 = vmatprep.subr.bf16.mxu1 %v3580_v42  ;;  %2534 = vmatprep.subr.bf16.mxu0 %v3583_v43  ;;  %v3652_v42 = vld [vmem:[#allocation8 + $0x3a4] ss:$16 sps:$4 sm:$0xff]   ;;  %v3655_v43 = vld [vmem:[#allocation8 + $0x3ac] ss:$16 sps:$4 sm:$0xff]  }
 0x21b   :  { %2371 = vmatpush1.bf16.msra.mxu1 %v3578_v45  ;;  %2535 = vmatpush1.bf16.msra.mxu0 %v3581_v46  ;;  %v3650_v45 = vld [vmem:[#allocation8 + $0x3a0] ss:$16 sps:$4 sm:$0xff]   ;;  %v3653_v46 = vld [vmem:[#allocation8 + $0x3a8] ss:$16 sps:$4 sm:$0xff]  }
 0x21c   :  { %2372 = vmatprep.subr.bf16.mxu1 %v3586_v47  ;;  %2536 = vmatprep.subr.bf16.mxu0 %v3589_v48  ;;  %v240_v47 = vrot.slane %v4186_v18, %v239_v41  ;;  %v3658_v48 = vld [vmem:[#allocation8 + $0x3c4] ss:$16 sps:$4 sm:$0xff]  }
 0x21f   :  { %2373 = vmatpush1.bf16.msra.mxu1 %v3584_v49  ;;  %2537 = vmatpush1.bf16.msra.mxu0 %v3587_v50  ;;  %v3661_v49 = vld [vmem:[#allocation8 + $0x3cc] ss:$16 sps:$4 sm:$0xff]   ;;  %v252_v50 = vrot.slane %v4186_v18, %v251_v44  ;;  %v3724_v44 = vld [vmem:[#allocation8 + $0x524] ss:$16 sps:$4 sm:$0xff]  }
 0x220   :  { %2374 = vmatprep.subr.bf16.mxu1 %v3592_v51  ;;  %2538 = vmatprep.subr.bf16.mxu0 %v3595_v52  ;;  %v3656_v51 = vld [vmem:[#allocation8 + $0x3c0] ss:$16 sps:$4 sm:$0xff]   ;;  %v3659_v52 = vld [vmem:[#allocation8 + $0x3c8] ss:$16 sps:$4 sm:$0xff]  }
 0x223   :  { %2375 = vmatpush1.bf16.msra.mxu1 %v3590_v53  ;;  %2539 = vmatpush1.bf16.msra.mxu0 %v3593_v54  ;;  %v665_v53 = vadd.f32 %v4199_v26, %v240_v47  ;;  %v3664_v54 = vld [vmem:[#allocation8 + $0x3e4] ss:$16 sps:$4 sm:$0xff]   ;;  %v3725_v47 = vld [vmem:[#allocation8 + $0x528] ss:$16 sps:$4 sm:$0xff]  }
 0x224   :  { %2376 = vmatprep.subr.bf16.mxu1 %v3598_v55  ;;  %2540 = vmatprep.subr.bf16.mxu0 %v3601_v56  ;;  %v3667_v55 = vld [vmem:[#allocation8 + $0x3ec] ss:$16 sps:$4 sm:$0xff]  }
 0x227   :  { %2377 = vmatpush1.bf16.msra.mxu1 %v3596_v57  ;;  %2541 = vmatpush1.bf16.msra.mxu0 %v3599_v58  ;;  %v3662_v57 = vld [vmem:[#allocation8 + $0x3e0] ss:$16 sps:$4 sm:$0xff]   ;;  %v3665_v58 = vld [vmem:[#allocation8 + $0x3e8] ss:$16 sps:$4 sm:$0xff]  }
 0x228   :  { %2378 = vmatprep.subr.bf16.mxu1 %v3604_v59  ;;  %2542 = vmatprep.subr.bf16.mxu0 %v3607_v60  ;;  %v755_v59 = vmax.f32 %v665_v53, 0.0  ;;  %v3670_v60 = vld [vmem:[#allocation8 + $0x404] ss:$16 sps:$4 sm:$0xff]   ;;  %v3739_v53 = vld [vmem:[#allocation8 + $0x56c] ss:$16 sps:$4 sm:$0xff]  }
 0x22a   :  { %v763_v26 = vpack.c.bf16 %v755_v59, %v755_v59  ;;  %v247_v59 = vsub.s32 4, %v4180_v16 }
 0x22b   :  { %2379 = vmatpush1.bf16.msra.mxu1 %v3602_v61  ;;  %2543 = vmatpush1.bf16.msra.mxu0 %v3605_v62  ;;  %v3673_v61 = vld [vmem:[#allocation8 + $0x40c] ss:$16 sps:$4 sm:$0xff]  }
 0x22c   :  { %2380 = vmatprep.subr.bf16.mxu1 %v3610_v63  ;;  %2544 = vmatprep.subr.bf16.mxu0 %v3613_v0  ;;  %v3668_v63 = vld [vmem:[#allocation8 + $0x400] ss:$16 sps:$4 sm:$0xff]   ;;  %v3671_v0 = vld [vmem:[#allocation8 + $0x408] ss:$16 sps:$4 sm:$0xff]  }
 0x22d   :  { %v4201_v5 = vpop.f32.mrb[4].mxu1  ;;  %v4203_v6 = vpop.f32.mrb[8].mxu0 }
 0x22e   :  { %v4205_v7 = vpop.f32.mrb[5].mxu1  ;;  %v4207_v8 = vpop.f32.mrb[9].mxu0 }
 0x22f   :  { %v709_v9 = vpop.f32.mrb[6].mxu1  ;;  %v750_v10 = vpop.f32.mrb[10].mxu0  ;;  %2381 = vmatpush1.bf16.msra.mxu1 %v3608_v1  ;;  %2545 = vmatpush1.bf16.msra.mxu0 %v3611_v2  ;;  %v708_v56 = vadd.f32 %v4205_v7, %v252_v50  ;;  %v3676_v2 = vld [vmem:[#allocation8 + $0x424] ss:$16 sps:$4 sm:$0xff]   ;;  %v3677_v7 = vld [vmem:[#allocation8 + $0x428] ss:$16 sps:$4 sm:$0xff]  }
 0x230   :  { %v710_v13 = vpop.f32.mrb[7].mxu1  ;;  %v751_v14 = vpop.f32.mrb[11].mxu0  ;;  %2382 = vmatprep.subr.bf16.mxu1 %v3616_v3  ;;  %2546 = vmatprep.subr.bf16.mxu0 %v3619_v4  ;;  %v3679_v3 = vld [vmem:[#allocation8 + $0x42c] ss:$16 sps:$4 sm:$0xff]   ;;  %v3674_v4 = vld [vmem:[#allocation8 + $0x420] ss:$16 sps:$4 sm:$0xff]  }
 0x231   :  { %v758_v62 = vmax.f32 %v708_v56, 0.0  ;;  %v3682_v9 = vld [vmem:[#allocation8 + $0x444] ss:$16 sps:$4 sm:$0xff]   ;;  %v3685_v10 = vld [vmem:[#allocation8 + $0x44c] ss:$16 sps:$4 sm:$0xff]  }
 0x232   :  { %v3688_v13 = vld [vmem:[#allocation8 + $0x464] ss:$16 sps:$4 sm:$0xff]   ;;  %v3691_v14 = vld [vmem:[#allocation8 + $0x46c] ss:$16 sps:$4 sm:$0xff]   ;;  %v3728_v50 = vld [vmem:[#allocation8 + $0x540] ss:$16 sps:$4 sm:$0xff]  }
 0x233   :  { %2383 = vmatpush1.bf16.msra.mxu1 %v3614_v11  ;;  %2547 = vmatpush1.bf16.msra.mxu0 %v3617_v12  ;;  %v766_v1 = vpack.c.bf16 %v758_v62, %v758_v62  ;;  %v3680_v11 = vld [vmem:[#allocation8 + $0x440] ss:$16 sps:$4 sm:$0xff]   ;;  %v3683_v12 = vld [vmem:[#allocation8 + $0x448] ss:$16 sps:$4 sm:$0xff]   ;;  %v3742_v56 = vld [vmem:[#allocation8 + $0x584] ss:$16 sps:$4 sm:$0xff]  }
 0x234   :  { %2384 = vmatprep.subr.bf16.mxu1 %v3622_v15  ;;  %2548 = vmatprep.subr.bf16.mxu0 %v3625_v21  ;;  %v3686_v15 = vld [vmem:[#allocation8 + $0x460] ss:$16 sps:$4 sm:$0xff]   ;;  %v3689_v21 = vld [vmem:[#allocation8 + $0x468] ss:$16 sps:$4 sm:$0xff]   ;;  %v3751_v62 = vld [vmem:[#allocation8 + $0x5ac] ss:$16 sps:$4 sm:$0xff]  }
 0x237   :  { %2385 = vmatpush1.bf16.msra.mxu1 %v3620_v22  ;;  %2549 = vmatpush1.bf16.msra.mxu0 %v3623_v23  ;;  %v3694_v22 = vld [vmem:[#allocation8 + $0x484] ss:$16 sps:$4 sm:$0xff]   ;;  %v3697_v23 = vld [vmem:[#allocation8 + $0x48c] ss:$16 sps:$4 sm:$0xff]  }
 0x238   :  { %2386 = vmatprep.subr.bf16.mxu1 %v3628_v25  ;;  %2550 = vmatprep.subr.bf16.mxu0 %v3631_v27  ;;  %v3692_v25 = vld [vmem:[#allocation8 + $0x480] ss:$16 sps:$4 sm:$0xff]   ;;  %v3695_v27 = vld [vmem:[#allocation8 + $0x488] ss:$16 sps:$4 sm:$0xff]  }
 0x23b   :  { %2387 = vmatpush1.bf16.msra.mxu1 %v3626_v28  ;;  %2551 = vmatpush1.bf16.msra.mxu0 %v3629_v24  ;;  %v3700_v28 = vld [vmem:[#allocation8 + $0x4a4] ss:$16 sps:$4 sm:$0xff]   ;;  %v3703_v24 = vld [vmem:[#allocation8 + $0x4ac] ss:$16 sps:$4 sm:$0xff]  }
 0x23c   :  { %2388 = vmatprep.subr.bf16.mxu1 %v3634_v29  ;;  %2552 = vmatprep.subr.bf16.mxu0 %v3637_v30  ;;  %v3698_v29 = vld [vmem:[#allocation8 + $0x4a0] ss:$16 sps:$4 sm:$0xff]   ;;  %v3701_v30 = vld [vmem:[#allocation8 + $0x4a8] ss:$16 sps:$4 sm:$0xff]  }
 0x23f   :  { %2389 = vmatpush1.bf16.msra.mxu1 %v3632_v31  ;;  %2553 = vmatpush1.bf16.msra.mxu0 %v3635_v32  ;;  %v3706_v31 = vld [vmem:[#allocation8 + $0x4c4] ss:$16 sps:$4 sm:$0xff]   ;;  %v3709_v32 = vld [vmem:[#allocation8 + $0x4cc] ss:$16 sps:$4 sm:$0xff]  }
 0x240   :  { %2390 = vmatprep.subr.bf16.mxu1 %v3640_v33  ;;  %2554 = vmatprep.subr.bf16.mxu0 %v3643_v34  ;;  %v3704_v33 = vld [vmem:[#allocation8 + $0x4c0] ss:$16 sps:$4 sm:$0xff]   ;;  %v3707_v34 = vld [vmem:[#allocation8 + $0x4c8] ss:$16 sps:$4 sm:$0xff]  }
 0x243   :  { %2391 = vmatpush1.bf16.msra.mxu1 %v3638_v35  ;;  %2555 = vmatpush1.bf16.msra.mxu0 %v3641_v36  ;;  %v3712_v35 = vld [vmem:[#allocation8 + $0x4e4] ss:$16 sps:$4 sm:$0xff]   ;;  %v3715_v36 = vld [vmem:[#allocation8 + $0x4ec] ss:$16 sps:$4 sm:$0xff]  }
 0x244   :  { %2392 = vmatprep.subr.bf16.mxu1 %v3646_v37  ;;  %2556 = vmatprep.subr.bf16.mxu0 %v3649_v38  ;;  %v3710_v37 = vld [vmem:[#allocation8 + $0x4e0] ss:$16 sps:$4 sm:$0xff]   ;;  %v3713_v38 = vld [vmem:[#allocation8 + $0x4e8] ss:$16 sps:$4 sm:$0xff]  }
 0x247   :  { %2393 = vmatpush1.bf16.msra.mxu1 %v3644_v39  ;;  %2557 = vmatpush1.bf16.msra.mxu0 %v3647_v40  ;;  %v3718_v39 = vld [vmem:[#allocation8 + $0x504] ss:$16 sps:$4 sm:$0xff]   ;;  %v3721_v40 = vld [vmem:[#allocation8 + $0x50c] ss:$16 sps:$4 sm:$0xff]  }
 0x248   :  { %2394 = vmatprep.subr.bf16.mxu1 %v3652_v42  ;;  %2558 = vmatprep.subr.bf16.mxu0 %v3655_v43  ;;  %v3716_v42 = vld [vmem:[#allocation8 + $0x500] ss:$16 sps:$4 sm:$0xff]   ;;  %v3719_v43 = vld [vmem:[#allocation8 + $0x508] ss:$16 sps:$4 sm:$0xff]  }
 0x24b   :  { %2395 = vmatpush1.bf16.msra.mxu1 %v3650_v45  ;;  %2559 = vmatpush1.bf16.msra.mxu0 %v3653_v46  ;;  %v3727_v45 = vld [vmem:[#allocation8 + $0x52c] ss:$16 sps:$4 sm:$0xff]   ;;  %v3722_v46 = vld [vmem:[#allocation8 + $0x520] ss:$16 sps:$4 sm:$0xff]  }
 0x24c   :  { %2396 = vmatprep.subr.bf16.mxu1 %v3658_v48  ;;  %2560 = vmatprep.subr.bf16.mxu0 %v3661_v49  ;;  %v3730_v48 = vld [vmem:[#allocation8 + $0x544] ss:$16 sps:$4 sm:$0xff]   ;;  %v3733_v49 = vld [vmem:[#allocation8 + $0x54c] ss:$16 sps:$4 sm:$0xff]  }
 0x24f   :  { %2397 = vmatpush1.bf16.msra.mxu1 %v3656_v51  ;;  %2561 = vmatpush1.bf16.msra.mxu0 %v3659_v52  ;;  %v3731_v51 = vld [vmem:[#allocation8 + $0x548] ss:$16 sps:$4 sm:$0xff]   ;;  %v3736_v52 = vld [vmem:[#allocation8 + $0x564] ss:$16 sps:$4 sm:$0xff]  }
 0x250   :  { %2398 = vmatprep.subr.bf16.mxu1 %v3664_v54  ;;  %2562 = vmatprep.subr.bf16.mxu0 %v3667_v55  ;;  %v3734_v54 = vld [vmem:[#allocation8 + $0x560] ss:$16 sps:$4 sm:$0xff]   ;;  %v3737_v55 = vld [vmem:[#allocation8 + $0x568] ss:$16 sps:$4 sm:$0xff]  }
 0x253   :  { %2399 = vmatpush1.bf16.msra.mxu1 %v3662_v57  ;;  %2563 = vmatpush1.bf16.msra.mxu0 %v3665_v58  ;;  %v3745_v57 = vld [vmem:[#allocation8 + $0x58c] ss:$16 sps:$4 sm:$0xff]   ;;  %v3740_v58 = vld [vmem:[#allocation8 + $0x580] ss:$16 sps:$4 sm:$0xff]  }
 0x254   :  { %2409 = vmatprep.subr.bf16.mxu1 %v3670_v60  ;;  %2573 = vmatprep.subr.bf16.mxu0 %v3673_v61  ;;  %v3743_v60 = vld [vmem:[#allocation8 + $0x588] ss:$16 sps:$4 sm:$0xff]   ;;  %v3748_v61 = vld [vmem:[#allocation8 + $0x5a4] ss:$16 sps:$4 sm:$0xff]  }
 0x256   :  { %2401 = vmatmul.mubr.bf16.vlgmr.msra.gmra.mrb[8].mxu1 %v763_v26  ;;  %2565 = vmatmul.mubr.bf16.vlgmr.msra.gmra.mrb[12].mxu0 %v763_v26  ;;  %v3746_v26 = vld [vmem:[#allocation8 + $0x5a0] ss:$16 sps:$4 sm:$0xff]  }
 0x257   :  { %2410 = vmatpush1.bf16.msra.mxu1 %v3668_v63  ;;  %2441 = vmatprep.mubr.bf16.mxu1 %v766_v1  ;;  %v259_v63 = vsub.s32 7, %v4180_v16 }
 0x258   :  { %2574 = vmatpush1.bf16.msra.mxu0 %v3671_v0  ;;  %2605 = vmatprep.mubr.bf16.mxu0 %v766_v1  ;;  %v248_v0 = vrot.slane %v4186_v18, %v247_v59  ;;  %v3749_v1 = vld [vmem:[#allocation8 + $0x5a8] ss:$16 sps:$4 sm:$0xff]   ;;  %v3812_v59 = vld [vmem:[#allocation8 + $0x700] ss:$16 sps:$4 sm:$0xff]  }
 0x259   :  { %2411 = vmatprep.subr.bf16.mxu1 %v3676_v2  ;;  %2575 = vmatprep.subr.bf16.mxu0 %v3679_v3  ;;  %v3754_v2 = vld [vmem:[#allocation8 + $0x5c4] ss:$16 sps:$4 sm:$0xff]   ;;  %v3757_v3 = vld [vmem:[#allocation8 + $0x5cc] ss:$16 sps:$4 sm:$0xff]  }
 0x25b   :  { %2412 = vmatpush1.bf16.msra.mxu1 %v3674_v4  ;;  %v260_v4 = vrot.slane %v4186_v18, %v259_v63  ;;  %v3818_v63 = vld [vmem:[#allocation8 + $0x720] ss:$16 sps:$4 sm:$0xff]  }
 0x25c   :  { %2576 = vmatpush1.bf16.msra.mxu0 %v3677_v7  ;;  %2413 = vmatprep.subr.bf16.mxu1 %v3682_v9  ;;  %v3752_v7 = vld [vmem:[#allocation8 + $0x5c0] ss:$16 sps:$4 sm:$0xff]   ;;  %v706_v9 = vadd.f32 %v4201_v5, %v248_v0  ;;  %v3826_v0 = vld [vmem:[#allocation8 + $0x744] ss:$16 sps:$4 sm:$0xff]  }
 0x25d   :  { %2577 = vmatprep.subr.bf16.mxu0 %v3685_v10  ;;  %v3755_v10 = vld [vmem:[#allocation8 + $0x5c8] ss:$16 sps:$4 sm:$0xff]   ;;  %v3764_v5 = vld [vmem:[#allocation8 + $0x600] ss:$16 sps:$4 sm:$0xff]  }
 0x25f   :  { %2414 = vmatpush1.bf16.msra.mxu1 %v3680_v11  ;;  %v3760_v11 = vld [vmem:[#allocation8 + $0x5e4] ss:$16 sps:$4 sm:$0xff]  }
 0x260   :  { %2578 = vmatpush1.bf16.msra.mxu0 %v3683_v12  ;;  %2415 = vmatprep.subr.bf16.mxu1 %v3688_v13  ;;  %v3763_v12 = vld [vmem:[#allocation8 + $0x5ec] ss:$16 sps:$4 sm:$0xff]   ;;  %v749_v13 = vadd.f32 %v4207_v8, %v260_v4  ;;  %v3832_v4 = vld [vmem:[#allocation8 + $0x764] ss:$16 sps:$4 sm:$0xff]  }
 0x261   :  { %2579 = vmatprep.subr.bf16.mxu0 %v3691_v14  ;;  %v3758_v14 = vld [vmem:[#allocation8 + $0x5e0] ss:$16 sps:$4 sm:$0xff]   ;;  %v3775_v8 = vld [vmem:[#allocation8 + $0x62c] ss:$16 sps:$4 sm:$0xff]  }
 0x263   :  { %2416 = vmatpush1.bf16.msra.mxu1 %v3686_v15  ;;  %v757_v15 = vmax.f32 %v706_v9, 0.0  ;;  %v3830_v9 = vld [vmem:[#allocation8 + $0x760] ss:$16 sps:$4 sm:$0xff]  }
 0x264   :  { %2580 = vmatpush1.bf16.msra.mxu0 %v3689_v21  ;;  %2417 = vmatprep.subr.bf16.mxu1 %v3694_v22  ;;  %v3761_v21 = vld [vmem:[#allocation8 + $0x5e8] ss:$16 sps:$4 sm:$0xff]   ;;  %v3766_v22 = vld [vmem:[#allocation8 + $0x604] ss:$16 sps:$4 sm:$0xff]  }
 0x265   :  { %2581 = vmatprep.subr.bf16.mxu0 %v3697_v23  ;;  %v3769_v23 = vld [vmem:[#allocation8 + $0x60c] ss:$16 sps:$4 sm:$0xff]  }
 0x267   :  { %2418 = vmatpush1.bf16.msra.mxu1 %v3692_v25  ;;  %v760_v25 = vmax.f32 %v749_v13, 0.0  ;;  %v3836_v13 = vld [vmem:[#allocation8 + $0x780] ss:$16 sps:$4 sm:$0xff]  }
 0x268   :  { %2582 = vmatpush1.bf16.msra.mxu0 %v3695_v27  ;;  %2419 = vmatprep.subr.bf16.mxu1 %v3700_v28  ;;  %v765_v27 = vpack.c.bf16 %v757_v15, %v757_v15  ;;  %v3767_v28 = vld [vmem:[#allocation8 + $0x608] ss:$16 sps:$4 sm:$0xff]  }
 0x269   :  { %2583 = vmatprep.subr.bf16.mxu0 %v3703_v24  ;;  %v3772_v24 = vld [vmem:[#allocation8 + $0x624] ss:$16 sps:$4 sm:$0xff]   ;;  %v3839_v15 = vld [vmem:[#allocation8 + $0x788] ss:$16 sps:$4 sm:$0xff]  }
 0x26b   :  { %2420 = vmatpush1.bf16.msra.mxu1 %v3698_v29  ;;  %v768_v29 = vpack.c.bf16 %v760_v25, %v760_v25 }
 0x26c   :  { %2584 = vmatpush1.bf16.msra.mxu0 %v3701_v30  ;;  %2421 = vmatprep.subr.bf16.mxu1 %v3706_v31  ;;  %v3770_v30 = vld [vmem:[#allocation8 + $0x620] ss:$16 sps:$4 sm:$0xff]   ;;  %v3773_v31 = vld [vmem:[#allocation8 + $0x628] ss:$16 sps:$4 sm:$0xff]  }
 0x26d   :  { %2585 = vmatprep.subr.bf16.mxu0 %v3709_v32  ;;  %v3778_v32 = vld [vmem:[#allocation8 + $0x644] ss:$16 sps:$4 sm:$0xff]  }
 0x26f   :  { %2422 = vmatpush1.bf16.msra.mxu1 %v3704_v33  ;;  %v3781_v33 = vld [vmem:[#allocation8 + $0x64c] ss:$16 sps:$4 sm:$0xff]  }
 0x270   :  { %2586 = vmatpush1.bf16.msra.mxu0 %v3707_v34  ;;  %2423 = vmatprep.subr.bf16.mxu1 %v3712_v35  ;;  %v3776_v34 = vld [vmem:[#allocation8 + $0x640] ss:$16 sps:$4 sm:$0xff]   ;;  %v3779_v35 = vld [vmem:[#allocation8 + $0x648] ss:$16 sps:$4 sm:$0xff]  }
 0x271   :  { %2587 = vmatprep.subr.bf16.mxu0 %v3715_v36  ;;  %v3784_v36 = vld [vmem:[#allocation8 + $0x664] ss:$16 sps:$4 sm:$0xff]  }
 0x273   :  { %2424 = vmatpush1.bf16.msra.mxu1 %v3710_v37  ;;  %v3787_v37 = vld [vmem:[#allocation8 + $0x66c] ss:$16 sps:$4 sm:$0xff]  }
 0x274   :  { %2588 = vmatpush1.bf16.msra.mxu0 %v3713_v38  ;;  %2425 = vmatprep.subr.bf16.mxu1 %v3718_v39  ;;  %v3782_v38 = vld [vmem:[#allocation8 + $0x660] ss:$16 sps:$4 sm:$0xff]   ;;  %v3785_v39 = vld [vmem:[#allocation8 + $0x668] ss:$16 sps:$4 sm:$0xff]  }
 0x275   :  { %2589 = vmatprep.subr.bf16.mxu0 %v3721_v40  ;;  %v3790_v40 = vld [vmem:[#allocation8 + $0x684] ss:$16 sps:$4 sm:$0xff]  }
 0x277   :  { %2426 = vmatpush1.bf16.msra.mxu1 %v3716_v42  ;;  %v3793_v42 = vld [vmem:[#allocation8 + $0x68c] ss:$16 sps:$4 sm:$0xff]  }
 0x278   :  { %2590 = vmatpush1.bf16.msra.mxu0 %v3719_v43  ;;  %2427 = vmatprep.subr.bf16.mxu1 %v3724_v44  ;;  %v3788_v43 = vld [vmem:[#allocation8 + $0x680] ss:$16 sps:$4 sm:$0xff]   ;;  %v3791_v44 = vld [vmem:[#allocation8 + $0x688] ss:$16 sps:$4 sm:$0xff]  }
 0x279   :  { %2591 = vmatprep.subr.bf16.mxu0 %v3727_v45  ;;  %v3796_v45 = vld [vmem:[#allocation8 + $0x6a4] ss:$16 sps:$4 sm:$0xff]  }
 0x27b   :  { %2428 = vmatpush1.bf16.msra.mxu1 %v3722_v46  ;;  %v3799_v46 = vld [vmem:[#allocation8 + $0x6ac] ss:$16 sps:$4 sm:$0xff]  }
 0x27c   :  { %2592 = vmatpush1.bf16.msra.mxu0 %v3725_v47  ;;  %2429 = vmatprep.subr.bf16.mxu1 %v3730_v48  ;;  %v3794_v47 = vld [vmem:[#allocation8 + $0x6a0] ss:$16 sps:$4 sm:$0xff]   ;;  %v3797_v48 = vld [vmem:[#allocation8 + $0x6a8] ss:$16 sps:$4 sm:$0xff]  }
 0x27d   :  { %2593 = vmatprep.subr.bf16.mxu0 %v3733_v49  ;;  %v3802_v49 = vld [vmem:[#allocation8 + $0x6c4] ss:$16 sps:$4 sm:$0xff]  }
 0x27f   :  { %2430 = vmatpush1.bf16.msra.mxu1 %v3728_v50  ;;  %v3805_v50 = vld [vmem:[#allocation8 + $0x6cc] ss:$16 sps:$4 sm:$0xff]  }
 0x280   :  { %2594 = vmatpush1.bf16.msra.mxu0 %v3731_v51  ;;  %2431 = vmatprep.subr.bf16.mxu1 %v3736_v52  ;;  %v3800_v51 = vld [vmem:[#allocation8 + $0x6c0] ss:$16 sps:$4 sm:$0xff]   ;;  %v3803_v52 = vld [vmem:[#allocation8 + $0x6c8] ss:$16 sps:$4 sm:$0xff]  }
 0x281   :  { %2595 = vmatprep.subr.bf16.mxu0 %v3739_v53  ;;  %v3808_v53 = vld [vmem:[#allocation8 + $0x6e4] ss:$16 sps:$4 sm:$0xff]  }
 0x283   :  { %2432 = vmatpush1.bf16.msra.mxu1 %v3734_v54  ;;  %v3811_v54 = vld [vmem:[#allocation8 + $0x6ec] ss:$16 sps:$4 sm:$0xff]  }
 0x284   :  { %2596 = vmatpush1.bf16.msra.mxu0 %v3737_v55  ;;  %2433 = vmatprep.subr.bf16.mxu1 %v3742_v56  ;;  %v3806_v55 = vld [vmem:[#allocation8 + $0x6e0] ss:$16 sps:$4 sm:$0xff]   ;;  %v3809_v56 = vld [vmem:[#allocation8 + $0x6e8] ss:$16 sps:$4 sm:$0xff]  }
 0x285   :  { %2597 = vmatprep.subr.bf16.mxu0 %v3745_v57  ;;  %v3814_v57 = vld [vmem:[#allocation8 + $0x704] ss:$16 sps:$4 sm:$0xff]  }
 0x287   :  { %2434 = vmatpush1.bf16.msra.mxu1 %v3740_v58  ;;  %v3817_v58 = vld [vmem:[#allocation8 + $0x70c] ss:$16 sps:$4 sm:$0xff]  }
 0x288   :  { %2598 = vmatpush1.bf16.msra.mxu0 %v3743_v60  ;;  %2435 = vmatprep.subr.bf16.mxu1 %v3748_v61  ;;  %v3815_v60 = vld [vmem:[#allocation8 + $0x708] ss:$16 sps:$4 sm:$0xff]   ;;  %v3820_v61 = vld [vmem:[#allocation8 + $0x724] ss:$16 sps:$4 sm:$0xff]  }
 0x289   :  { %2599 = vmatprep.subr.bf16.mxu0 %v3751_v62  ;;  %v3823_v62 = vld [vmem:[#allocation8 + $0x72c] ss:$16 sps:$4 sm:$0xff]  }
 0x28b   :  { %2436 = vmatpush1.bf16.msra.mxu1 %v3746_v26  ;;  %v3821_v26 = vld [vmem:[#allocation8 + $0x728] ss:$16 sps:$4 sm:$0xff]  }
 0x28c   :  { %2600 = vmatpush1.bf16.msra.mxu0 %v3749_v1  ;;  %2437 = vmatprep.subr.bf16.mxu1 %v3754_v2  ;;  %v3829_v1 = vld [vmem:[#allocation8 + $0x74c] ss:$16 sps:$4 sm:$0xff]   ;;  %v3824_v2 = vld [vmem:[#allocation8 + $0x740] ss:$16 sps:$4 sm:$0xff]  }
 0x28d   :  { %2601 = vmatprep.subr.bf16.mxu0 %v3757_v3  ;;  %v3827_v3 = vld [vmem:[#allocation8 + $0x748] ss:$16 sps:$4 sm:$0xff]  }
 0x28f   :  { %2438 = vmatpush1.bf16.msra.mxu1 %v3752_v7  ;;  %v3835_v7 = vld [vmem:[#allocation8 + $0x76c] ss:$16 sps:$4 sm:$0xff]  }
 0x290   :  { %2602 = vmatpush1.bf16.msra.mxu0 %v3755_v10  ;;  %2439 = vmatprep.subr.bf16.mxu1 %v3760_v11  ;;  %v3833_v10 = vld [vmem:[#allocation8 + $0x768] ss:$16 sps:$4 sm:$0xff]   ;;  %v3838_v11 = vld [vmem:[#allocation8 + $0x784] ss:$16 sps:$4 sm:$0xff]  }
 0x291   :  { %2603 = vmatprep.subr.bf16.mxu0 %v3763_v12  ;;  %v3841_v12 = vld [vmem:[#allocation8 + $0x78c] ss:$16 sps:$4 sm:$0xff]  }
 0x293   :  { %2440 = vmatpush1.bf16.msra.mxu1 %v3758_v14  ;;  %v255_v14 = vsub.s32 6, %v4180_v16 }
 0x294   :  { %2604 = vmatpush1.bf16.msra.mxu0 %v3761_v21  ;;  %2450 = vmatprep.subr.bf16.mxu1 %v3766_v22  ;;  %v3844_v21 = vld [vmem:[#allocation8 + $0x7a4] ss:$16 sps:$4 sm:$0xff]   ;;  %v3847_v22 = vld [vmem:[#allocation8 + $0x7ac] ss:$16 sps:$4 sm:$0xff]  }
 0x295   :  { %2614 = vmatprep.subr.bf16.mxu0 %v3769_v23  ;;  %v3842_v23 = vld [vmem:[#allocation8 + $0x7a0] ss:$16 sps:$4 sm:$0xff]   ;;  %v256_v25 = vrot.slane %v4186_v18, %v255_v14  ;;  %v3857_v18 = vld [vmem:[#allocation8 + $0x7e8] ss:$16 sps:$4 sm:$0xff]  }
 0x296   :  { %2442 = vmatmul.mubr.bf16.vlgmr.msra.gmra.mrb[8].mxu1 %v765_v27 }
 0x297   :  { %2606 = vmatmul.mubr.bf16.vlgmr.msra.gmra.mrb[12].mxu0 %v765_v27  ;;  %2451 = vmatpush1.bf16.msra.mxu1 %v3764_v5  ;;  %v3845_v5 = vld [vmem:[#allocation8 + $0x7a8] ss:$16 sps:$4 sm:$0xff]   ;;  %v3850_v27 = vld [vmem:[#allocation8 + $0x7c4] ss:$16 sps:$4 sm:$0xff]  }
 0x298   :  { %2482 = vmatprep.mubr.bf16.mxu1 %v768_v29  ;;  %2615 = vmatpush1.bf16.msra.mxu0 %v3767_v28  ;;  %v3853_v28 = vld [vmem:[#allocation8 + $0x7cc] ss:$16 sps:$4 sm:$0xff]  }
 0x299   :  { %2646 = vmatprep.mubr.bf16.mxu0 %v768_v29  ;;  %2452 = vmatprep.subr.bf16.mxu1 %v3772_v24  ;;  %v3848_v24 = vld [vmem:[#allocation8 + $0x7c0] ss:$16 sps:$4 sm:$0xff]   ;;  %v747_v29 = vadd.f32 %v4203_v6, %v256_v25 }
 0x29a   :  { %2616 = vmatprep.subr.bf16.mxu0 %v3775_v8  ;;  %v3851_v8 = vld [vmem:[#allocation8 + $0x7c8] ss:$16 sps:$4 sm:$0xff]   ;;  %v3863_v6 = vld [vmem:[#allocation10 + $0x80] sm:$0xff]  }
 0x29b   :  { %2453 = vmatpush1.bf16.msra.mxu1 %v3770_v30  ;;  %v3856_v30 = vld [vmem:[#allocation8 + $0x7e4] ss:$16 sps:$4 sm:$0xff]  }
 0x29c   :  { %2617 = vmatpush1.bf16.msra.mxu0 %v3773_v31  ;;  %2454 = vmatprep.subr.bf16.mxu1 %v3778_v32  ;;  %v3859_v31 = vld [vmem:[#allocation8 + $0x7ec] ss:$16 sps:$4 sm:$0xff]   ;;  %v3854_v32 = vld [vmem:[#allocation8 + $0x7e0] ss:$16 sps:$4 sm:$0xff]  }
 0x29d   :  { %2618 = vmatprep.subr.bf16.mxu0 %v3781_v33  ;;  %v759_v33 = vmax.f32 %v747_v29, 0.0 }
 0x29f   :  { %2455 = vmatpush1.bf16.msra.mxu1 %v3776_v34  ;;  %v3860_v34 = vld [vmem:[#allocation10 + $0x40] sm:$0xff]  }
 0x2a0   :  { %2619 = vmatpush1.bf16.msra.mxu0 %v3779_v35  ;;  %2456 = vmatprep.subr.bf16.mxu1 %v3784_v36  ;;  %v3861_v35 = vld [vmem:[#allocation10 + $0xc0] sm:$0xff]  }
 0x2a1   :  { %2620 = vmatprep.subr.bf16.mxu0 %v3787_v37  ;;  %v3862_v36 = vld [vmem:[#allocation10] sm:$0xff]   ;;  %v767_v37 = vpack.c.bf16 %v759_v33, %v759_v33 }
 0x2a3   :  { %2457 = vmatpush1.bf16.msra.mxu1 %v3782_v38  ;;  %v3864_v38 = vld [vmem:[#allocation10 + $0x48] sm:$0xff]  }
 0x2a4   :  { %2621 = vmatpush1.bf16.msra.mxu0 %v3785_v39  ;;  %2458 = vmatprep.subr.bf16.mxu1 %v3790_v40  ;;  %v3865_v39 = vld [vmem:[#allocation10 + $0xc8] sm:$0xff]  }
 0x2a5   :  { %2622 = vmatprep.subr.bf16.mxu0 %v3793_v42  ;;  %v3866_v40 = vld [vmem:[#allocation10 + $0x8] sm:$0xff]  }
 0x2a6   :  { %v3867_v42 = vld [vmem:[#allocation10 + $0x88] sm:$0xff]  }
 0x2a7   :  { %2459 = vmatpush1.bf16.msra.mxu1 %v3788_v43  ;;  %v3868_v43 = vld [vmem:[#allocation10 + $0x50] sm:$0xff]  }
 0x2a8   :  { %2623 = vmatpush1.bf16.msra.mxu0 %v3791_v44  ;;  %2460 = vmatprep.subr.bf16.mxu1 %v3796_v45  ;;  %v3869_v44 = vld [vmem:[#allocation10 + $0xd0] sm:$0xff]  }
 0x2a9   :  { %2624 = vmatprep.subr.bf16.mxu0 %v3799_v46  ;;  %v3870_v45 = vld [vmem:[#allocation10 + $0x10] sm:$0xff]  }
 0x2aa   :  { %v3871_v46 = vld [vmem:[#allocation10 + $0x90] sm:$0xff]  }
 0x2ab   :  { %2461 = vmatpush1.bf16.msra.mxu1 %v3794_v47  ;;  %v3872_v47 = vld [vmem:[#allocation10 + $0x58] sm:$0xff]  }
 0x2ac   :  { %2625 = vmatpush1.bf16.msra.mxu0 %v3797_v48  ;;  %2462 = vmatprep.subr.bf16.mxu1 %v3802_v49  ;;  %v3873_v48 = vld [vmem:[#allocation10 + $0xd8] sm:$0xff]  }
 0x2ad   :  { %2626 = vmatprep.subr.bf16.mxu0 %v3805_v50  ;;  %v3874_v49 = vld [vmem:[#allocation10 + $0x18] sm:$0xff]  }
 0x2ae   :  { %v3875_v50 = vld [vmem:[#allocation10 + $0x98] sm:$0xff]  }
 0x2af   :  { %2463 = vmatpush1.bf16.msra.mxu1 %v3800_v51  ;;  %v3876_v51 = vld [vmem:[#allocation10 + $0x60] sm:$0xff]  }
 0x2b0   :  { %2627 = vmatpush1.bf16.msra.mxu0 %v3803_v52  ;;  %2464 = vmatprep.subr.bf16.mxu1 %v3808_v53  ;;  %v3877_v52 = vld [vmem:[#allocation10 + $0xe0] sm:$0xff]  }
 0x2b1   :  { %2628 = vmatprep.subr.bf16.mxu0 %v3811_v54  ;;  %v3878_v53 = vld [vmem:[#allocation10 + $0x20] sm:$0xff]  }
 0x2b2   :  { %v3879_v54 = vld [vmem:[#allocation10 + $0xa0] sm:$0xff]  }
 0x2b3   :  { %2465 = vmatpush1.bf16.msra.mxu1 %v3806_v55  ;;  %v3880_v55 = vld [vmem:[#allocation10 + $0x68] sm:$0xff]  }
 0x2b4   :  { %2629 = vmatpush1.bf16.msra.mxu0 %v3809_v56  ;;  %2466 = vmatprep.subr.bf16.mxu1 %v3814_v57  ;;  %v3881_v56 = vld [vmem:[#allocation10 + $0xe8] sm:$0xff]  }
 0x2b5   :  { %2630 = vmatprep.subr.bf16.mxu0 %v3817_v58  ;;  %v3882_v57 = vld [vmem:[#allocation10 + $0x28] sm:$0xff]  }
 0x2b6   :  { %v3883_v58 = vld [vmem:[#allocation10 + $0xa8] sm:$0xff]  }
 0x2b7   :  { %2467 = vmatpush1.bf16.msra.mxu1 %v3812_v59  ;;  %v3884_v59 = vld [vmem:[#allocation10 + $0x70] sm:$0xff]  }
 0x2b8   :  { %2631 = vmatpush1.bf16.msra.mxu0 %v3815_v60  ;;  %2468 = vmatprep.subr.bf16.mxu1 %v3820_v61  ;;  %v3885_v60 = vld [vmem:[#allocation10 + $0xf0] sm:$0xff]  }
 0x2b9   :  { %2632 = vmatprep.subr.bf16.mxu0 %v3823_v62  ;;  %v3886_v61 = vld [vmem:[#allocation10 + $0x30] sm:$0xff]  }
 0x2ba   :  { %v3887_v62 = vld [vmem:[#allocation10 + $0xb0] sm:$0xff]  }
 0x2bb   :  { %2469 = vmatpush1.bf16.msra.mxu1 %v3818_v63  ;;  %v3888_v63 = vld [vmem:[#allocation10 + $0x78] sm:$0xff]  }
 0x2bc   :  { %2633 = vmatpush1.bf16.msra.mxu0 %v3821_v26  ;;  %2470 = vmatprep.subr.bf16.mxu1 %v3826_v0  ;;  %v3889_v26 = vld [vmem:[#allocation10 + $0xf8] sm:$0xff]  }
 0x2bd   :  { %2634 = vmatprep.subr.bf16.mxu0 %v3829_v1  ;;  %v3890_v0 = vld [vmem:[#allocation10 + $0x38] sm:$0xff]  }
 0x2be   :  { %v3891_v1 = vld [vmem:[#allocation10 + $0xb8] sm:$0xff]  }
 0x2bf   :  { %2471 = vmatpush1.bf16.msra.mxu1 %v3824_v2  ;;  %v1025_v2 = vld [vmem:[%s4258_s6] sm:$0xf] }
 0x2c0   :  { %2635 = vmatpush1.bf16.msra.mxu0 %v3827_v3  ;;  %2472 = vmatprep.subr.bf16.mxu1 %v3832_v4  ;;  %v1030_v3 = vrot.slane %v1025_v2, %v231_v17  ;;  %v1038_v4 = vrot.slane %v1025_v2, %v239_v41 }
 0x2c1   :  { %2636 = vmatprep.subr.bf16.mxu0 %v3835_v7  ;;  %v1034_v7 = vrot.slane %v1025_v2, %v235_v19 }
 0x2c3   :  { %2473 = vmatpush1.bf16.msra.mxu1 %v3830_v9  ;;  %v1042_v9 = vrot.slane %v1025_v2, %v243_v20 }
 0x2c4   :  { %2637 = vmatpush1.bf16.msra.mxu0 %v3833_v10  ;;  %2474 = vmatprep.subr.bf16.mxu1 %v3838_v11 }
 0x2c5   :  { %2638 = vmatprep.subr.bf16.mxu0 %v3841_v12 }
 0x2c7   :  { %2475 = vmatpush1.bf16.msra.mxu1 %v3836_v13 }
 0x2c8   :  { %2639 = vmatpush1.bf16.msra.mxu0 %v3839_v15  ;;  %2476 = vmatprep.subr.bf16.mxu1 %v3844_v21 }
 0x2c9   :  { %2640 = vmatprep.subr.bf16.mxu0 %v3847_v22 }
 0x2cb   :  { %2477 = vmatpush1.bf16.msra.mxu1 %v3842_v23 }
 0x2cc   :  { %2641 = vmatpush1.bf16.msra.mxu0 %v3845_v5  ;;  %2478 = vmatprep.subr.bf16.mxu1 %v3850_v27 }
 0x2cd   :  { %2642 = vmatprep.subr.bf16.mxu0 %v3853_v28 }
 0x2cf   :  { %2479 = vmatpush1.bf16.msra.mxu1 %v3848_v24 }
 0x2d0   :  { %2643 = vmatpush1.bf16.msra.mxu0 %v3851_v8  ;;  %2480 = vmatprep.subr.bf16.mxu1 %v3856_v30 }
 0x2d1   :  { %2644 = vmatprep.subr.bf16.mxu0 %v3859_v31  ;;  %v3347_v31 = vld [vmem:[%s4260_s8] ss:$0 sm:$0xff] }
 0x2d3   :  { %2481 = vmatpush1.bf16.msra.mxu1 %v3854_v32 }
 0x2d4   :  { %2645 = vmatpush1.bf16.msra.mxu0 %v3857_v18  ;;  %3382 = vmatprep.subr.bf16.mxu1 %v3860_v34 }
 0x2d5   :  { %3404 = vmatprep.subr.bf16.mxu0 %v3861_v35 }
 0x2d6   :  { %2483 = vmatmul.mubr.bf16.vlgmr.msra.gmra.mrb[8].mxu1 %v767_v37 }
 0x2d7   :  { %2647 = vmatmul.mubr.bf16.vlgmr.msra.gmra.mrb[12].mxu0 %v767_v37  ;;  %3383 = vmatpush3.bf16.msra.mxu1 %v3862_v36 }
 0x2d8   :  { %3405 = vmatpush3.bf16.msra.mxu0 %v3863_v6  ;;  %3384 = vmatprep.subr.bf16.mxu1 %v3864_v38 }
 0x2d9   :  { %3406 = vmatprep.subr.bf16.mxu0 %v3865_v39 }
 0x2db   :  { %3385 = vmatpush3.bf16.msra.mxu1 %v3866_v40 }
 0x2dc   :  { %3407 = vmatpush3.bf16.msra.mxu0 %v3867_v42  ;;  %3386 = vmatprep.subr.bf16.mxu1 %v3868_v43 }
 0x2dd   :  { %3408 = vmatprep.subr.bf16.mxu0 %v3869_v44 }
 0x2df   :  { %3387 = vmatpush3.bf16.msra.mxu1 %v3870_v45 }
 0x2e0   :  { %3409 = vmatpush3.bf16.msra.mxu0 %v3871_v46  ;;  %3388 = vmatprep.subr.bf16.mxu1 %v3872_v47 }
 0x2e1   :  { %3410 = vmatprep.subr.bf16.mxu0 %v3873_v48 }
 0x2e3   :  { %3389 = vmatpush3.bf16.msra.mxu1 %v3874_v49 }
 0x2e4   :  { %3411 = vmatpush3.bf16.msra.mxu0 %v3875_v50  ;;  %3390 = vmatprep.subr.bf16.mxu1 %v3876_v51 }
 0x2e5   :  { %3412 = vmatprep.subr.bf16.mxu0 %v3877_v52 }
 0x2e7   :  { %3391 = vmatpush3.bf16.msra.mxu1 %v3878_v53 }
 0x2e8   :  { %3413 = vmatpush3.bf16.msra.mxu0 %v3879_v54  ;;  %3392 = vmatprep.subr.bf16.mxu1 %v3880_v55 }
 0x2e9   :  { %3414 = vmatprep.subr.bf16.mxu0 %v3881_v56 }
 0x2eb   :  { %3393 = vmatpush3.bf16.msra.mxu1 %v3882_v57 }
 0x2ec   :  { %3415 = vmatpush3.bf16.msra.mxu0 %v3883_v58  ;;  %3394 = vmatprep.subr.bf16.mxu1 %v3884_v59 }
 0x2ed   :  { %3416 = vmatprep.subr.bf16.mxu0 %v3885_v60 }
 0x2ef   :  { %3395 = vmatpush3.bf16.msra.mxu1 %v3886_v61 }
 0x2f0   :  { %3417 = vmatpush3.bf16.msra.mxu0 %v3887_v62  ;;  %3396 = vmatprep.subr.bf16.mxu1 %v3888_v63 }
 0x2f1   :  { %3418 = vmatprep.subr.bf16.mxu0 %v3889_v26 }
 0x2f3   :  { %3397 = vmatpush3.bf16.msra.mxu1 %v3890_v0 }
 0x2f4   :  { %3419 = vmatpush3.bf16.msra.mxu0 %v3891_v1 }
 0x3a9   :  { %v2484_v10 = vpop.f32.mrb[8].mxu1 }
 0x3aa   :  { %v3432_v11 = vadd.f32 %v2484_v10, %v1030_v3  ;;  %v2648_v12 = vpop.f32.mrb[12].mxu0  ;;  %v2486_v13 = vpop.f32.mrb[9].mxu1 }
 0x3ab   :  { %v3434_v14 = vadd.f32 %v2648_v12, %v1038_v4  ;;  %v3433_v15 = vadd.f32 %v2486_v13, %v1034_v7  ;;  %v2650_v21 = vpop.f32.mrb[13].mxu0  ;;  %v2488_v22 = vpop.f32.mrb[10].mxu1 }
 0x3ac   :  { %v2655_v23 = vmax.f32 %v3432_v11, 0.0  ;;  %v3435_v25 = vadd.f32 %v2650_v21, %v1042_v9  ;;  %v2652_v17 = vpop.f32.mrb[14].mxu0  ;;  %v2489_v5 = vpop.f32.mrb[11].mxu1 }
 0x3ad   :  { %v2657_v27 = vmax.f32 %v3434_v14, 0.0  ;;  %v2656_v41 = vmax.f32 %v3433_v15, 0.0  ;;  %v2653_v28 = vpop.f32.mrb[15].mxu0 }
 0x3ae   :  { %v2658_v24 = vmax.f32 %v3435_v25, 0.0  ;;  %v2659_v29 = vpack.c.bf16 %v2655_v23, %v2655_v23 }
 0x3af   :  { %v2660_v19 = vpack.c.bf16 %v2656_v41, %v2656_v41  ;;  %v2661_v20 = vpack.c.bf16 %v2657_v27, %v2657_v27 }
 0x3b0   :  { %v2662_v16 = vpack.c.bf16 %v2658_v24, %v2658_v24 }
 0x3b1   :  { %2958 = vmatprep.mubr.bf16.mxu1 %v2660_v19 }
 0x3b2   :  { %2998 = vmatprep.mubr.bf16.mxu0 %v2662_v16  ;;  %2959 = vmatmul.mubr.bf16.vlgmr.msra.gmra.mrb[12].mxu1 %v2659_v29 }
 0x3b3   :  { %2999 = vmatmul.mubr.bf16.vlgmr.msra.gmra.mrb[16].mxu0 %v2661_v20 }
 0x485   :  { %v3398_v8 = vpop.f32.mrb[12].mxu1 }
 0x486   :  { %v3420_v30 = vpop.f32.mrb[16].mxu0  ;;  %v3399_v32 = vpop.f32.mrb[13].mxu1 }
 0x487   :  { %v3400_v33 = vadd.f32 %v3399_v32, %v3398_v8  ;;  %v3421_v18 = vpop.f32.mrb[17].mxu0  ;;  %v3401_v34 = vpop.f32.mrb[14].mxu1 }
 0x488   :  { %v3422_v35 = vadd.f32 %v3421_v18, %v3420_v30  ;;  %v3423_v36 = vpop.f32.mrb[18].mxu0  ;;  %v3402_v37 = vpop.f32.mrb[15].mxu1 }
 0x489   :  { %v2961_v6 = vadd.f32 %v3400_v33, %v3347_v31  ;;  %v3424_v38 = vpop.f32.mrb[19].mxu0 }
 0x48b   :  { %v3001_v39 = vadd.f32 %v3422_v35, %v2961_v6 }
 0x48d   :  { %3006 = vst [vmem:[#allocation11] sm:$0xff] %v3001_v39 }
 0x48e   :  { %4013 = shalt.err (!%p4010_p2)
}
 0x48f   :  { %s4014_s15 = scalar_lea.hbm %s4261_s9, 128 }
 0x490   :  { %p4015_p3 = scmp.ne.s32.totalorder %s4261_s9, %s4014_s15  ;;  %p4018_p4 = scmp.lt.u32.totalorder %s4014_s15, %s4261_s9 }
 0x492   :  { %p4020_p5 = pnand %p4018_p4, %p4015_p3 }
 0x494   :  { %4023 = shalt.err (!%p4020_p5)
}
 0x495   :  { %3016 = dma.vmem_to_hbm [thread:$0]  %s3014_s10, 128, %s4261_s9, [#allocation4]  }
 0x496   :  { %4030 = dma.done.wait [#allocation4], 128  }
 0x497   :  { %4031 = vsyncadd [#allocation4], 4294967168 }
 0x498   :  { %3020 = vsyncpa [#allocation3], 1 }
 0x499   :  { %3021 = vsyncpa [#allocation6], 1 }
 0x49a   :  { %3022 = vsyncpa [#allocation9], 1 }
 0x49b   :  { %3023 = vsyncpa [#allocation4], 1 }

</bundles_post_ra>
